<compile_context>
chip_gen: v7x
topology: tpu7x:2x2x1
jax: 0.10.0
libtpu: 0.0.40
codegen_flags: <defaults>
</compile_context>

<pallas_src>
import functools

import jax
import jax.numpy as jnp
from jax import lax
from jax.experimental import pallas as pl
from jax.experimental.pallas import tpu as pltpu

N_SIGMA = 1
NUM_CLASS = 3
FG_WEIGHT = 1.0
CHUNK = 16                    # sublane rows per in-kernel chunk (bf16 tile)


def _fold8(x):
    """(CHUNK, 128) -> (8, 128) partial sum using tile-aligned VALU adds only."""
    r = x[0:8, :]
    for i in range(1, x.shape[0] // 8):
        r = r + x[8 * i:8 * (i + 1), :]
    return r


def _spatial_emb_kernel(cnts_sm, pred_ref, labels_ref, inst_ref,
                        logit_ref, stats_ref, sfg_ref, var_ref,
                        *, K, H, W, sx, sy, has_pad):
    """One batch item per grid step (two-phase, spatially chunked).

    cnts_sm    : (B, K) int32 SMEM  per-instance pixel counts (scalar prefetch)
    pred_ref   : (1, 6, P, 128)     model output (bf16/f32)
    labels_ref : (1, 3, P, 128)     one-hot semantic labels (bf16/f32)
    inst_ref   : (1, P, 128)        instance ids as bf16 (0 = background)
    logit_ref  : (1, K, P, 128)     lovasz-ready logits 2*dist-1 (bf16, out)
    stats_ref  : (1, 8, 128) f32    row0 var_sum, row1 seed_sum, row2 focal_sum
    sfg_ref    : (8, 128) f32 VMEM  foreground seed-loss accumulator (scratch)
    var_ref    : (8, 128) f32 VMEM  two-pass variance accumulator (scratch)
    """
    f32 = jnp.float32
    CH = CHUNK
    P = pred_ref.shape[2]
    NC = P // CH
    N = H * W
    seed_ch = 2 + N_SIGMA + NUM_CLASS - 1          # seed == last class logit
    b = pl.program_id(0)

    def coords(c0):
        row = jax.lax.broadcasted_iota(jnp.int32, (CH, 128), 0) + c0
        col = jax.lax.broadcasted_iota(jnp.int32, (CH, 128), 1)
        flat = (row * 128 + col).astype(f32)
        # float "floor div": exact for H*W < 2**22 (asserted on the host).
        yi = jnp.floor((flat + 0.5) * (1.0 / float(W)))
        xi = flat - yi * float(W)
        valid = (flat < float(N)).astype(f32) if has_pad else None
        return xi * sx, yi * sy, valid

    # Scratch persists across grid steps -> zero it per image.
    sfg_ref[...] = jnp.zeros_like(sfg_ref)
    var_ref[...] = jnp.zeros_like(var_ref)

    # Presence of each instance slot, read as SMEM scalars (host-computed).
    present = [cnts_sm[b, k] > 0 for k in range(K)]

    # --------- phase 1: per-instance moments + bg-seed + focal loss ---------
    zeros8 = jnp.zeros((8, 128), f32)
    init = ((zeros8,) * K, (zeros8,) * K, (zeros8,) * K, (zeros8,) * K,
            zeros8, zeros8)

    def p1_body(j, carry):
        cnt_a, sxa, sya, ssa, bg_a, foc_a = carry
        c0 = pl.multiple_of(j * CH, CH)
        xm, ym, valid = coords(c0)

        sigma = pred_ref[0, 2, pl.ds(c0, CH), :].astype(f32)
        inst = inst_ref[0, pl.ds(c0, CH), :].astype(f32)
        ncnt, nsx, nsy, nss = [], [], [], []
        for k in range(K):                       # K is small and static
            m = (inst == float(k + 1)).astype(f32)
            ncnt.append(cnt_a[k] + _fold8(m))
            nsx.append(sxa[k] + _fold8(m * xm))
            nsy.append(sya[k] + _fold8(m * ym))
            nss.append(ssa[k] + _fold8(m * sigma))

        lab0 = labels_ref[0, 0, pl.ds(c0, CH), :].astype(f32)
        lab1 = labels_ref[0, 1, pl.ds(c0, CH), :].astype(f32)
        lab2 = labels_ref[0, 2, pl.ds(c0, CH), :].astype(f32)
        seed_logit = pred_ref[0, seed_ch, pl.ds(c0, CH), :].astype(f32)
        seed = jax.nn.sigmoid(seed_logit)

        # background seed loss: sum over (last label == 0) of seed^2
        bg = (lab2 == 0.0).astype(f32)
        if has_pad:
            bg = bg * valid
        bg_new = bg_a + _fold8(bg * seed * seed)

        # multiclass focal loss (gamma=2), targets = argmax of the one-hots.
        # TODO(synk): FocalLoss('multiclass', 2) is not defined in the source;
        # this is the per-class BCE-with-logits focal loss.
        m0 = jnp.logical_and(lab0 >= lab1, lab0 >= lab2)
        m1 = jnp.logical_and(jnp.logical_not(m0), lab1 >= lab2)
        m2 = jnp.logical_not(jnp.logical_or(m0, m1))
        targets = (m0.astype(f32), m1.astype(f32), m2.astype(f32))
        foc = jnp.zeros((CH, 128), f32)
        for c in range(NUM_CLASS):
            if c == NUM_CLASS - 1:               # last class logit == seed ch
                x, p = seed_logit, seed
            else:
                x = pred_ref[0, 2 + N_SIGMA + c, pl.ds(c0, CH), :].astype(f32)
                p = jax.nn.sigmoid(x)
            t = targets[c]
            # stable BCE with one log: log(1+exp(-|x|)) == -log(max(p, 1-p))
            bce = jnp.maximum(x, 0.0) - x * t - jnp.log(jnp.maximum(p, 1.0 - p))
            pt = t * p + (1.0 - t) * (1.0 - p)   # == exp(-bce) for binary t
            w = 1.0 - pt
            foc = foc + w * w * bce
        if has_pad:
            foc = foc * valid
        foc_new = foc_a + _fold8(foc)

        return (tuple(ncnt), tuple(nsx), tuple(nsy), tuple(nss),
                bg_new, foc_new)

    cnt_acc, sx_acc, sy_acc, ss_acc, bg_acc, foc_acc = lax.fori_loop(
        0, NC, p1_body, init)

    # Collapse the (8, 128) accumulators to (1, 1) per-instance quantities.
    inv11, cx11, cy11, smean11, sexp11 = [], [], [], [], []
    for k in range(K):
        cnt = jnp.sum(cnt_acc[k], keepdims=True)              # (1, 1)
        inv = 1.0 / jnp.maximum(cnt, 1.0)
        inv11.append(inv)
        cx11.append(jnp.sum(sx_acc[k], keepdims=True) * inv)  # to_center=True
        cy11.append(jnp.sum(sy_acc[k], keepdims=True) * inv)
        sm = jnp.sum(ss_acc[k], keepdims=True) * inv
        smean11.append(sm)
        sexp11.append(jnp.exp(10.0 * sm))

    # --------- phase 2: dist / lovasz logits / fg-seed / variance -----------
    @pl.loop(0, NC)
    def _phase2(j):
        c0 = pl.multiple_of(j * CH, CH)
        xm, ym, valid = coords(c0)
        ex = jnp.tanh(pred_ref[0, 0, pl.ds(c0, CH), :].astype(f32)) + xm
        ey = jnp.tanh(pred_ref[0, 1, pl.ds(c0, CH), :].astype(f32)) + ym
        sigma = pred_ref[0, 2, pl.ds(c0, CH), :].astype(f32)
        seed = jax.nn.sigmoid(pred_ref[0, seed_ch, pl.ds(c0, CH), :].astype(f32))
        inst = inst_ref[0, pl.ds(c0, CH), :].astype(f32)

        for k in range(K):
            @pl.when(present[k])
            def _present(k=k, c0=c0):
                m = (inst == float(k + 1)).astype(f32)
                dx = ex - cx11[k]
                dy = ey - cy11[k]
                dist = jnp.exp(-(dx * dx + dy * dy) * sexp11[k])
                if has_pad:   # padded lanes forced to -1 (dropped on host)
                    logit = 2.0 * dist * valid - 1.0
                else:
                    logit = 2.0 * dist - 1.0
                logit_ref[0, k, pl.ds(c0, CH), :] = logit.astype(logit_ref.dtype)
                dsd = seed - dist
                sfg_ref[...] = sfg_ref[...] + _fold8(m * dsd * dsd)
                dv = sigma - smean11[k]          # exact two-pass variance
                var_ref[...] = var_ref[...] + _fold8(m * dv * dv) * inv11[k]

            @pl.when(jnp.logical_not(present[k]))
            def _absent(k=k, c0=c0):
                logit_ref[0, k, pl.ds(c0, CH), :] = jnp.full(
                    (CH, 128), -1.0, logit_ref.dtype)

    # ----------------------- pack per-image stats ---------------------------
    var_sum = jnp.sum(var_ref[...], keepdims=True)
    seed_sum = (jnp.sum(bg_acc, keepdims=True)
                + FG_WEIGHT * jnp.sum(sfg_ref[...], keepdims=True))
    focal_sum = jnp.sum(foc_acc, keepdims=True)
    rows8 = jax.lax.broadcasted_iota(jnp.int32, (8, 128), 0)
    stat = (jnp.where(rows8 == 0, var_sum, 0.0)
            + jnp.where(rows8 == 1, seed_sum, 0.0)
            + jnp.where(rows8 == 2, focal_sum, 0.0))
    stats_ref[0, :, :] = stat.astype(f32)


def lovasz_hinge_batch(logits, labels):
    """Batched Lovasz hinge over the last axis; logits/labels shape (..., N)."""
    # TODO(synk): the data-dependent sort of the Lovasz extension has no clean
    # Pallas/TPU equivalent; it stays in plain (batched) JAX.
    signs = 2.0 * labels - 1.0
    errors = 1.0 - logits * signs
    perm = jnp.argsort(-errors, axis=-1)                 # descending
    errors_sorted = jnp.take_along_axis(errors, perm, axis=-1)
    gt_sorted = jnp.take_along_axis(labels, perm, axis=-1)
    gts = jnp.sum(gt_sorted, axis=-1, keepdims=True)
    intersection = gts - jnp.cumsum(gt_sorted, axis=-1)
    union = gts + jnp.cumsum(1.0 - gt_sorted, axis=-1)
    jaccard = 1.0 - intersection / union
    jaccard = jnp.concatenate(
        [jaccard[..., :1], jaccard[..., 1:] - jaccard[..., :-1]], axis=-1)
    return jnp.sum(jax.nn.relu(errors_sorted) * jaccard, axis=-1)


@functools.partial(jax.jit, static_argnames=("max_instances", "resolusion",
                                             "w_inst", "w_var", "w_seed",
                                             "input_dtype"))
def multi_spatial_emb_loss(prediction, labels, instances, *, max_instances=3,
                           resolusion=16, w_inst=1.0, w_var=10.0, w_seed=1.0,
                           input_dtype=jnp.bfloat16):
    B, C, H, W = prediction.shape
    K = max_instances
    assert K <= 128, "instance ids are streamed as small bf16 integers"
    N = H * W
    assert N < (1 << 22), "in-kernel f32 coordinate math is exact below 2**22 px"
    P = pl.cdiv(N, 128)                       # lane-dense layout: (P, 128)
    P_pad = pl.cdiv(P, CHUNK) * CHUNK         # chunk-aligned sublane count
    Np = P_pad * 128
    pad = Np - N
    has_pad = pad != 0

    # torch.linspace(0, dim // resolusion, dim) == j * (dim // resolusion)/(dim-1)
    sx = float(W // resolusion) / float(max(W - 1, 1))
    sy = float(H // resolusion) / float(max(H - 1, 1))

    def to_planes(x, dtype):
        x = x.reshape(B, -1, N)
        if pad:
            x = jnp.pad(x, ((0, 0), (0, 0), (0, pad)))
        return x.reshape(B, -1, P_pad, 128).astype(dtype)

    pred_p = to_planes(prediction, input_dtype)            # (B, C, P_pad, 128)
    lab_p = to_planes(labels, input_dtype)                 # exact in bf16
    inst_flat = instances.reshape(B, N).astype(jnp.int32)
    # stream ids as bf16 (exact for ids <= K+1); ids > K never match any slot.
    inst_small = jnp.minimum(inst_flat, K + 1).astype(jnp.bfloat16)
    if pad:
        inst_small = jnp.pad(inst_small, ((0, 0), (0, pad)))
    inst_p = inst_small.reshape(B, P_pad, 128)

    # per-(image, instance) pixel counts: reused by the Lovasz epilogue and
    # scalar-prefetched into SMEM so the kernel can pl.when-skip empty slots.
    ids = jnp.arange(1, K + 1, dtype=jnp.int32)
    masks_bool = inst_flat[:, None, :] == ids[None, :, None]      # (B, K, N)
    counts = jnp.sum(masks_bool, axis=-1, dtype=jnp.int32)        # (B, K)

    out_dtype = jnp.bfloat16          # lovasz logits live in [-1, 1]
    it = jnp.dtype(input_dtype).itemsize
    ot = jnp.dtype(out_dtype).itemsize
    block_bytes = ((C + NUM_CLASS) * Np * it          # pred + labels
                   + Np * 2                           # instances (bf16)
                   + K * Np * ot + 8 * 128 * 4)       # outputs
    try:
        cap = int(getattr(pltpu.get_tpu_info(), "vmem_capacity_bytes", 64 << 20))
    except Exception:                                  # pragma: no cover
        cap = 64 << 20
    # chunked compute -> in-kernel temporaries are O(CHUNK*128); the limit only
    # needs to cover the double-buffered DMA blocks plus headroom, capped to
    # 3/4 of physical VMEM (v7x has 64 MiB per TC).
    vmem_limit = int(min(max(2 * block_bytes + (8 << 20), 16 << 20),
                         (cap * 3) // 4))

    logits, stats = pl.pallas_call(
        functools.partial(_spatial_emb_kernel, K=K, H=H, W=W, sx=sx, sy=sy,
                          has_pad=has_pad),
        out_shape=(
            jax.ShapeDtypeStruct((B, K, P_pad, 128), out_dtype),
            jax.ShapeDtypeStruct((B, 8, 128), jnp.float32),
        ),
        grid_spec=pltpu.PrefetchScalarGridSpec(
            num_scalar_prefetch=1,
            grid=(B,),
            in_specs=[
                pl.BlockSpec((1, C, P_pad, 128), lambda b, cnts: (b, 0, 0, 0)),
                pl.BlockSpec((1, NUM_CLASS, P_pad, 128),
                             lambda b, cnts: (b, 0, 0, 0)),
                pl.BlockSpec((1, P_pad, 128), lambda b, cnts: (b, 0, 0)),
            ],
            out_specs=[
                pl.BlockSpec((1, K, P_pad, 128), lambda b, cnts: (b, 0, 0, 0)),
                pl.BlockSpec((1, 8, 128), lambda b, cnts: (b, 0, 0)),
            ],
            scratch_shapes=[
                pltpu.VMEM((8, 128), jnp.float32),   # fg seed-loss accumulator
                pltpu.VMEM((8, 128), jnp.float32),   # variance accumulator
            ],
        ),
        compiler_params=pltpu.CompilerParams(
            # TODO(synk): with B == 1 per chip v7x's 2nd TensorCore idles; add
            # a spatial/K parallel axis if that case matters.
            dimension_semantics=("parallel",),
            vmem_limit_bytes=vmem_limit),
    )(counts, pred_p, lab_p, inst_p)

    # ------------- host epilogue: one batched Lovasz over (B, K) -------------
    var_sum = stats[:, 0, 0]                               # (B,)
    seed_sum = stats[:, 1, 0]
    focal_sum = stats[:, 2, 0]
    present = counts > 0                                   # (B, K)
    obj = jnp.sum(present.astype(jnp.float32), axis=1)     # (B,)

    masks = masks_bool.astype(jnp.float32)                 # (B, K, N)
    logits_flat = logits.reshape(B, K, Np)[..., :N].astype(jnp.float32)
    lov = lovasz_hinge_batch(logits_flat, masks)           # (B, K)
    inst_loss = jnp.sum(jnp.where(present, lov, 0.0), axis=1)

    inv_obj = jnp.where(obj > 0.0, 1.0 / jnp.maximum(obj, 1.0), 0.0)
    per_image = (w_inst * inst_loss * inv_obj
                 + w_var * var_sum * inv_obj
                 + w_seed * seed_sum / float(H * W))
    binary_closs = jnp.sum(focal_sum) / float(B * H * W)
    loss = jnp.mean(per_image) + binary_closs
    return loss   # (loss + prediction.sum() * 0).mean() == loss for a scalar


if __name__ == "__main__":
    key = jax.random.PRNGKey(0)
    k1, k2, k3 = jax.random.split(key, 3)

    B, C, H, W = 2, 2 + N_SIGMA + NUM_CLASS, 16, 16        # 6 prediction channels
    prediction = jax.random.normal(k1, (B, C, H, W), dtype=jnp.float32)
    cls = jax.random.randint(k2, (B, H, W), 0, NUM_CLASS)
    labels = jnp.transpose(jax.nn.one_hot(cls, NUM_CLASS, dtype=jnp.float32),
                           (0, 3, 1, 2))                   # (B, 3, H, W)
    instances = jax.random.randint(k3, (B, 1, H, W), 0, 4).astype(jnp.int32)

    loss = multi_spatial_emb_loss(prediction, labels, instances,
                                  max_instances=3, resolusion=16)
    jax.block_until_ready(loss)
    print("KERNEL_OK")
</pallas_src>

<mosaic_0001>
module attributes {stable_mosaic.version = 11 : i64} {
  func.func private @main(%arg0: i32) attributes {dimension_semantics = [#tpu.dimension_semantics<core_parallel>], iteration_bounds = array<i64: 2>, tpu.core_type = #tpu.core_type<sc_scalar_subcore>, window_params = []} {
    return
  }
}

module attributes {stable_mosaic.version = 11 : i64} {
  func.func private @main(%arg0: i32) attributes {dimension_semantics = [#tpu.dimension_semantics<core_parallel>], iteration_bounds = array<i64: 2>, tpu.core_type = #tpu.core_type<sc_scalar_subcore>, window_params = []} {
    return
  }
}

module attributes {stable_mosaic.version = 11 : i64} {
  func.func @_spatial_emb_kernel(%arg0: i32, %arg1: memref<2x3xi32, #tpu.memory_space<smem>>, %arg2: memref<1x6x16x128xbf16, #tpu.memory_space<vmem>>, %arg3: memref<1x3x16x128xbf16, #tpu.memory_space<vmem>>, %arg4: memref<1x16x128xbf16, #tpu.memory_space<vmem>>, %arg5: memref<1x3x16x128xbf16, #tpu.memory_space<vmem>>, %arg6: memref<1x8x128xf32, #tpu.memory_space<vmem>>, %arg7: memref<8x128xf32, #tpu.memory_space<vmem>>, %arg8: memref<8x128xf32, #tpu.memory_space<vmem>>) attributes {dimension_semantics = [#tpu.dimension_semantics<parallel>], iteration_bounds = array<i64: 2>, scalar_prefetch = 1 : i64, scratch_operands = 2 : i64, tpu.core_type = #tpu.core_type<tc>, window_params = [{transform_indices = @transform_0, window_bounds = array<i64: 1, 6, 16, 128>}, {transform_indices = @transform_1, window_bounds = array<i64: 1, 3, 16, 128>}, {transform_indices = @transform_2, window_bounds = array<i64: 1, 16, 128>}, {transform_indices = @transform_3, window_bounds = array<i64: 1, 3, 16, 128>}, {transform_indices = @transform_4, window_bounds = array<i64: 1, 8, 128>}]} {
    %cst = arith.constant 0.000000e+00 : f32
    %0 = vector.broadcast %cst : f32 to vector<8x128xf32>
    %c0 = arith.constant 0 : index
    %c0_0 = arith.constant 0 : index
    %1 = vector.load %arg7[%c0, %c0_0] : memref<8x128xf32, #tpu.memory_space<vmem>>, vector<8x128xf32>
    tpu.vector_store %arg7[%c0, %c0_0], %0 {strides = array<i32>} : memref<8x128xf32, #tpu.memory_space<vmem>>, vector<8x128xf32>,
    %cst_1 = arith.constant 0.000000e+00 : f32
    %2 = vector.broadcast %cst_1 : f32 to vector<8x128xf32>
    %c0_2 = arith.constant 0 : index
    %c0_3 = arith.constant 0 : index
    %3 = vector.load %arg8[%c0_2, %c0_3] : memref<8x128xf32, #tpu.memory_space<vmem>>, vector<8x128xf32>
    tpu.vector_store %arg8[%c0_2, %c0_3], %2 {strides = array<i32>} : memref<8x128xf32, #tpu.memory_space<vmem>>, vector<8x128xf32>,
    %4 = arith.index_cast %arg0 : i32 to index
    %c0_4 = arith.constant 0 : index
    %5 = memref.load %arg1[%4, %c0_4] : memref<2x3xi32, #tpu.memory_space<smem>>
    %c0_i32 = arith.constant 0 : i32
    %6 = arith.cmpi sgt, %5, %c0_i32 : i32
    %7 = arith.index_cast %arg0 : i32 to index
    %c1 = arith.constant 1 : index
    %8 = memref.load %arg1[%7, %c1] : memref<2x3xi32, #tpu.memory_space<smem>>
    %c0_i32_5 = arith.constant 0 : i32
    %9 = arith.cmpi sgt, %8, %c0_i32_5 : i32
    %10 = arith.index_cast %arg0 : i32 to index
    %c2 = arith.constant 2 : index
    %11 = memref.load %arg1[%10, %c2] : memref<2x3xi32, #tpu.memory_space<smem>>
    %c0_i32_6 = arith.constant 0 : i32
    %12 = arith.cmpi sgt, %11, %c0_i32_6 : i32
    %cst_7 = arith.constant 0.000000e+00 : f32
    %13 = vector.broadcast %cst_7 : f32 to vector<8x128xf32>
    %c0_i32_8 = arith.constant 0 : i32
    %c16_i32 = arith.constant 16 : i32
    %14 = arith.muli %c0_i32_8, %c16_i32 : i32
    %15 = tpu.assume_multiple %14, 16 : i32
    %16 = tpu.iota {dimensions = array<i32: 0>} : vector<16x128xi32>
    %17 = vector.broadcast %15 : i32 to vector<16x128xi32>
    %18 = arith.addi %16, %17 : vector<16x128xi32>
    %19 = tpu.iota {dimensions = array<i32: 1>} : vector<16x128xi32>
    %c128_i32 = arith.constant 128 : i32
    %20 = vector.broadcast %c128_i32 : i32 to vector<16x128xi32>
    %21 = arith.muli %18, %20 : vector<16x128xi32>
    %22 = arith.addi %21, %19 : vector<16x128xi32>
    %23 = arith.sitofp %22 : vector<16x128xi32> to vector<16x128xf32>
    %cst_9 = arith.constant 5.000000e-01 : f32
    %24 = vector.broadcast %cst_9 : f32 to vector<16x128xf32>
    %25 = arith.addf %23, %24 : vector<16x128xf32>
    %cst_10 = arith.constant 6.250000e-02 : f32
    %26 = vector.broadcast %cst_10 : f32 to vector<16x128xf32>
    %27 = arith.mulf %25, %26 : vector<16x128xf32>
    %28 = math.floor %27 : vector<16x128xf32>
    %cst_11 = arith.constant 1.600000e+01 : f32
    %29 = vector.broadcast %cst_11 : f32 to vector<16x128xf32>
    %30 = arith.mulf %28, %29 : vector<16x128xf32>
    %31 = arith.subf %23, %30 : vector<16x128xf32>
    %cst_12 = arith.constant 2.560000e+02 : f32
    %32 = vector.broadcast %cst_12 : f32 to vector<16x128xf32>
    %33 = arith.cmpf olt, %23, %32 : vector<16x128xf32>
    %34 = arith.extui %33 : vector<16x128xi1> to vector<16x128xi32>
    %35 = arith.sitofp %34 : vector<16x128xi32> to vector<16x128xf32>
    %cst_13 = arith.constant 0.0666666701 : f32
    %36 = vector.broadcast %cst_13 : f32 to vector<16x128xf32>
    %37 = arith.mulf %31, %36 : vector<16x128xf32>
    %cst_14 = arith.constant 0.0666666701 : f32
    %38 = vector.broadcast %cst_14 : f32 to vector<16x128xf32>
    %39 = arith.mulf %28, %38 : vector<16x128xf32>
    %c0_15 = arith.constant 0 : index
    %c2_16 = arith.constant 2 : index
    %40 = arith.index_cast %15 : i32 to index
    %c0_17 = arith.constant 0 : index
    %41 = vector.load %arg2[%c0_15, %c2_16, %40, %c0_17] : memref<1x6x16x128xbf16, #tpu.memory_space<vmem>>, vector<1x1x16x128xbf16>
    %42 = vector.shape_cast %41 : vector<1x1x16x128xbf16> to vector<16x128xbf16>
    %43 = arith.extf %42 : vector<16x128xbf16> to vector<16x128xf32>
    %c0_18 = arith.constant 0 : index
    %44 = arith.index_cast %15 : i32 to index
    %c0_19 = arith.constant 0 : index
    %45 = vector.load %arg4[%c0_18, %44, %c0_19] : memref<1x16x128xbf16, #tpu.memory_space<vmem>>, vector<1x16x128xbf16>
    %46 = vector.shape_cast %45 : vector<1x16x128xbf16> to vector<16x128xbf16>
    %47 = arith.extf %46 : vector<16x128xbf16> to vector<16x128xf32>
    %cst_20 = arith.constant 1.000000e+00 : f32
    %48 = vector.broadcast %cst_20 : f32 to vector<16x128xf32>
    %49 = arith.cmpf oeq, %47, %48 : vector<16x128xf32>
    %50 = arith.extui %49 : vector<16x128xi1> to vector<16x128xi32>
    %51 = arith.sitofp %50 : vector<16x128xi32> to vector<16x128xf32>
    %52 = vector.extract_strided_slice %51 {offsets = [0, 0], sizes = [8, 128], strides = [1, 1]} : vector<16x128xf32> to vector<8x128xf32>
    %53 = vector.extract_strided_slice %51 {offsets = [8, 0], sizes = [8, 128], strides = [1, 1]} : vector<16x128xf32> to vector<8x128xf32>
    %54 = arith.addf %52, %53 : vector<8x128xf32>
    %55 = arith.addf %13, %54 : vector<8x128xf32>
    %56 = arith.mulf %51, %37 : vector<16x128xf32>
    %57 = vector.extract_strided_slice %56 {offsets = [0, 0], sizes = [8, 128], strides = [1, 1]} : vector<16x128xf32> to vector<8x128xf32>
    %58 = vector.extract_strided_slice %56 {offsets = [8, 0], sizes = [8, 128], strides = [1, 1]} : vector<16x128xf32> to vector<8x128xf32>
    %59 = arith.addf %57, %58 : vector<8x128xf32>
    %60 = arith.addf %13, %59 : vector<8x128xf32>
    %61 = arith.mulf %51, %39 : vector<16x128xf32>
    %62 = vector.extract_strided_slice %61 {offsets = [0, 0], sizes = [8, 128], strides = [1, 1]} : vector<16x128xf32> to vector<8x128xf32>
    %63 = vector.extract_strided_slice %61 {offsets = [8, 0], sizes = [8, 128], strides = [1, 1]} : vector<16x128xf32> to vector<8x128xf32>
    %64 = arith.addf %62, %63 : vector<8x128xf32>
    %65 = arith.addf %13, %64 : vector<8x128xf32>
    %66 = arith.mulf %51, %43 : vector<16x128xf32>
    %67 = vector.extract_strided_slice %66 {offsets = [0, 0], sizes = [8, 128], strides = [1, 1]} : vector<16x128xf32> to vector<8x128xf32>
    %68 = vector.extract_strided_slice %66 {offsets = [8, 0], sizes = [8, 128], strides = [1, 1]} : vector<16x128xf32> to vector<8x128xf32>
    %69 = arith.addf %67, %68 : vector<8x128xf32>
    %70 = arith.addf %13, %69 : vector<8x128xf32>
    %cst_21 = arith.constant 2.000000e+00 : f32
    %71 = vector.broadcast %cst_21 : f32 to vector<16x128xf32>
    %72 = arith.cmpf oeq, %47, %71 : vector<16x128xf32>
    %73 = arith.extui %72 : vector<16x128xi1> to vector<16x128xi32>
    %74 = arith.sitofp %73 : vector<16x128xi32> to vector<16x128xf32>
    %75 = vector.extract_strided_slice %74 {offsets = [0, 0], sizes = [8, 128], strides = [1, 1]} : vector<16x128xf32> to vector<8x128xf32>
    %76 = vector.extract_strided_slice %74 {offsets = [8, 0], sizes = [8, 128], strides = [1, 1]} : vector<16x128xf32> to vector<8x128xf32>
    %77 = arith.addf %75, %76 : vector<8x128xf32>
    %78 = arith.addf %13, %77 : vector<8x128xf32>
    %79 = arith.mulf %74, %37 : vector<16x128xf32>
    %80 = vector.extract_strided_slice %79 {offsets = [0, 0], sizes = [8, 128], strides = [1, 1]} : vector<16x128xf32> to vector<8x128xf32>
    %81 = vector.extract_strided_slice %79 {offsets = [8, 0], sizes = [8, 128], strides = [1, 1]} : vector<16x128xf32> to vector<8x128xf32>
    %82 = arith.addf %80, %81 : vector<8x128xf32>
    %83 = arith.addf %13, %82 : vector<8x128xf32>
    %84 = arith.mulf %74, %39 : vector<16x128xf32>
    %85 = vector.extract_strided_slice %84 {offsets = [0, 0], sizes = [8, 128], strides = [1, 1]} : vector<16x128xf32> to vector<8x128xf32>
    %86 = vector.extract_strided_slice %84 {offsets = [8, 0], sizes = [8, 128], strides = [1, 1]} : vector<16x128xf32> to vector<8x128xf32>
    %87 = arith.addf %85, %86 : vector<8x128xf32>
    %88 = arith.addf %13, %87 : vector<8x128xf32>
    %89 = arith.mulf %74, %43 : vector<16x128xf32>
    %90 = vector.extract_strided_slice %89 {offsets = [0, 0], sizes = [8, 128], strides = [1, 1]} : vector<16x128xf32> to vector<8x128xf32>
    %91 = vector.extract_strided_slice %89 {offsets = [8, 0], sizes = [8, 128], strides = [1, 1]} : vector<16x128xf32> to vector<8x128xf32>
    %92 = arith.addf %90, %91 : vector<8x128xf32>
    %93 = arith.addf %13, %92 : vector<8x128xf32>
    %cst_22 = arith.constant 3.000000e+00 : f32
    %94 = vector.broadcast %cst_22 : f32 to vector<16x128xf32>
    %95 = arith.cmpf oeq, %47, %94 : vector<16x128xf32>
    %96 = arith.extui %95 : vector<16x128xi1> to vector<16x128xi32>
    %97 = arith.sitofp %96 : vector<16x128xi32> to vector<16x128xf32>
    %98 = vector.extract_strided_slice %97 {offsets = [0, 0], sizes = [8, 128], strides = [1, 1]} : vector<16x128xf32> to vector<8x128xf32>
    %99 = vector.extract_strided_slice %97 {offsets = [8, 0], sizes = [8, 128], strides = [1, 1]} : vector<16x128xf32> to vector<8x128xf32>
    %100 = arith.addf %98, %99 : vector<8x128xf32>
    %101 = arith.addf %13, %100 : vector<8x128xf32>
    %102 = arith.mulf %97, %37 : vector<16x128xf32>
    %103 = vector.extract_strided_slice %102 {offsets = [0, 0], sizes = [8, 128], strides = [1, 1]} : vector<16x128xf32> to vector<8x128xf32>
    %104 = vector.extract_strided_slice %102 {offsets = [8, 0], sizes = [8, 128], strides = [1, 1]} : vector<16x128xf32> to vector<8x128xf32>
    %105 = arith.addf %103, %104 : vector<8x128xf32>
    %106 = arith.addf %13, %105 : vector<8x128xf32>
    %107 = arith.mulf %97, %39 : vector<16x128xf32>
    %108 = vector.extract_strided_slice %107 {offsets = [0, 0], sizes = [8, 128], strides = [1, 1]} : vector<16x128xf32> to vector<8x128xf32>
    %109 = vector.extract_strided_slice %107 {offsets = [8, 0], sizes = [8, 128], strides = [1, 1]} : vector<16x128xf32> to vector<8x128xf32>
    %110 = arith.addf %108, %109 : vector<8x128xf32>
    %111 = arith.addf %13, %110 : vector<8x128xf32>
    %112 = arith.mulf %97, %43 : vector<16x128xf32>
    %113 = vector.extract_strided_slice %112 {offsets = [0, 0], sizes = [8, 128], strides = [1, 1]} : vector<16x128xf32> to vector<8x128xf32>
    %114 = vector.extract_strided_slice %112 {offsets = [8, 0], sizes = [8, 128], strides = [1, 1]} : vector<16x128xf32> to vector<8x128xf32>
    %115 = arith.addf %113, %114 : vector<8x128xf32>
    %116 = arith.addf %13, %115 : vector<8x128xf32>
    %c0_23 = arith.constant 0 : index
    %c0_24 = arith.constant 0 : index
    %117 = arith.index_cast %15 : i32 to index
    %c0_25 = arith.constant 0 : index
    %118 = vector.load %arg3[%c0_23, %c0_24, %117, %c0_25] : memref<1x3x16x128xbf16, #tpu.memory_space<vmem>>, vector<1x1x16x128xbf16>
    %119 = vector.shape_cast %118 : vector<1x1x16x128xbf16> to vector<16x128xbf16>
    %120 = arith.extf %119 : vector<16x128xbf16> to vector<16x128xf32>
    %c0_26 = arith.constant 0 : index
    %c1_27 = arith.constant 1 : index
    %121 = arith.index_cast %15 : i32 to index
    %c0_28 = arith.constant 0 : index
    %122 = vector.load %arg3[%c0_26, %c1_27, %121, %c0_28] : memref<1x3x16x128xbf16, #tpu.memory_space<vmem>>, vector<1x1x16x128xbf16>
    %123 = vector.shape_cast %122 : vector<1x1x16x128xbf16> to vector<16x128xbf16>
    %124 = arith.extf %123 : vector<16x128xbf16> to vector<16x128xf32>
    %c0_29 = arith.constant 0 : index
    %c2_30 = arith.constant 2 : index
    %125 = arith.index_cast %15 : i32 to index
    %c0_31 = arith.constant 0 : index
    %126 = vector.load %arg3[%c0_29, %c2_30, %125, %c0_31] : memref<1x3x16x128xbf16, #tpu.memory_space<vmem>>, vector<1x1x16x128xbf16>
    %127 = vector.shape_cast %126 : vector<1x1x16x128xbf16> to vector<16x128xbf16>
    %128 = arith.extf %127 : vector<16x128xbf16> to vector<16x128xf32>
    %c0_32 = arith.constant 0 : index
    %c5 = arith.constant 5 : index
    %129 = arith.index_cast %15 : i32 to index
    %c0_33 = arith.constant 0 : index
    %130 = vector.load %arg2[%c0_32, %c5, %129, %c0_33] : memref<1x6x16x128xbf16, #tpu.memory_space<vmem>>, vector<1x1x16x128xbf16>
    %131 = vector.shape_cast %130 : vector<1x1x16x128xbf16> to vector<16x128xbf16>
    %132 = arith.extf %131 : vector<16x128xbf16> to vector<16x128xf32>
    %133 = arith.negf %132 : vector<16x128xf32>
    %134 = math.exp %133 : vector<16x128xf32>
    %cst_34 = arith.constant 1.000000e+00 : f32
    %135 = vector.broadcast %cst_34 : f32 to vector<16x128xf32>
    %136 = arith.addf %135, %134 : vector<16x128xf32>
    %137 = arith.divf %135, %136 : vector<16x128xf32>
    %cst_35 = arith.constant 0.000000e+00 : f32
    %138 = vector.broadcast %cst_35 : f32 to vector<16x128xf32>
    %139 = arith.cmpf oeq, %128, %138 : vector<16x128xf32>
    %140 = arith.extui %139 : vector<16x128xi1> to vector<16x128xi32>
    %141 = arith.sitofp %140 : vector<16x128xi32> to vector<16x128xf32>
    %142 = arith.mulf %141, %35 : vector<16x128xf32>
    %143 = arith.mulf %142, %137 : vector<16x128xf32>
    %144 = arith.mulf %143, %137 : vector<16x128xf32>
    %145 = vector.extract_strided_slice %144 {offsets = [0, 0], sizes = [8, 128], strides = [1, 1]} : vector<16x128xf32> to vector<8x128xf32>
    %146 = vector.extract_strided_slice %144 {offsets = [8, 0], sizes = [8, 128], strides = [1, 1]} : vector<16x128xf32> to vector<8x128xf32>
    %147 = arith.addf %145, %146 : vector<8x128xf32>
    %148 = arith.addf %13, %147 : vector<8x128xf32>
    %149 = arith.cmpf oge, %120, %124 : vector<16x128xf32>
    %150 = arith.cmpf oge, %120, %128 : vector<16x128xf32>
    %151 = arith.andi %149, %150 : vector<16x128xi1>
    %cst_36 = arith.constant dense<true> : vector<16x128xi1>
    %152 = arith.xori %151, %cst_36 : vector<16x128xi1>
    %153 = arith.cmpf oge, %124, %128 : vector<16x128xf32>
    %154 = arith.andi %152, %153 : vector<16x128xi1>
    %155 = arith.ori %151, %154 : vector<16x128xi1>
    %cst_37 = arith.constant dense<true> : vector<16x128xi1>
    %156 = arith.xori %155, %cst_37 : vector<16x128xi1>
    %157 = arith.extui %151 : vector<16x128xi1> to vector<16x128xi32>
    %158 = arith.sitofp %157 : vector<16x128xi32> to vector<16x128xf32>
    %159 = arith.extui %154 : vector<16x128xi1> to vector<16x128xi32>
    %160 = arith.sitofp %159 : vector<16x128xi32> to vector<16x128xf32>
    %161 = arith.extui %156 : vector<16x128xi1> to vector<16x128xi32>
    %162 = arith.sitofp %161 : vector<16x128xi32> to vector<16x128xf32>
    %cst_38 = arith.constant 0.000000e+00 : f32
    %163 = vector.broadcast %cst_38 : f32 to vector<16x128xf32>
    %c0_39 = arith.constant 0 : index
    %c3 = arith.constant 3 : index
    %164 = arith.index_cast %15 : i32 to index
    %c0_40 = arith.constant 0 : index
    %165 = vector.load %arg2[%c0_39, %c3, %164, %c0_40] : memref<1x6x16x128xbf16, #tpu.memory_space<vmem>>, vector<1x1x16x128xbf16>
    %166 = vector.shape_cast %165 : vector<1x1x16x128xbf16> to vector<16x128xbf16>
    %167 = arith.extf %166 : vector<16x128xbf16> to vector<16x128xf32>
    %168 = arith.negf %167 : vector<16x128xf32>
    %169 = math.exp %168 : vector<16x128xf32>
    %cst_41 = arith.constant 1.000000e+00 : f32
    %170 = vector.broadcast %cst_41 : f32 to vector<16x128xf32>
    %171 = arith.addf %170, %169 : vector<16x128xf32>
    %172 = arith.divf %170, %171 : vector<16x128xf32>
    %cst_42 = arith.constant 0.000000e+00 : f32
    %173 = vector.broadcast %cst_42 : f32 to vector<16x128xf32>
    %174 = arith.maximumf %167, %173 : vector<16x128xf32>
    %175 = arith.mulf %167, %158 : vector<16x128xf32>
    %176 = arith.subf %174, %175 : vector<16x128xf32>
    %cst_43 = arith.constant 1.000000e+00 : f32
    %177 = vector.broadcast %cst_43 : f32 to vector<16x128xf32>
    %178 = arith.subf %177, %172 : vector<16x128xf32>
    %179 = arith.maximumf %172, %178 : vector<16x128xf32>
    %180 = math.log %179 : vector<16x128xf32>
    %181 = arith.subf %176, %180 : vector<16x128xf32>
    %182 = arith.mulf %158, %172 : vector<16x128xf32>
    %cst_44 = arith.constant 1.000000e+00 : f32
    %183 = vector.broadcast %cst_44 : f32 to vector<16x128xf32>
    %184 = arith.subf %183, %158 : vector<16x128xf32>
    %cst_45 = arith.constant 1.000000e+00 : f32
    %185 = vector.broadcast %cst_45 : f32 to vector<16x128xf32>
    %186 = arith.subf %185, %172 : vector<16x128xf32>
    %187 = arith.mulf %184, %186 : vector<16x128xf32>
    %188 = arith.addf %182, %187 : vector<16x128xf32>
    %cst_46 = arith.constant 1.000000e+00 : f32
    %189 = vector.broadcast %cst_46 : f32 to vector<16x128xf32>
    %190 = arith.subf %189, %188 : vector<16x128xf32>
    %191 = arith.mulf %190, %190 : vector<16x128xf32>
    %192 = arith.mulf %191, %181 : vector<16x128xf32>
    %193 = arith.addf %163, %192 : vector<16x128xf32>
    %c0_47 = arith.constant 0 : index
    %c4 = arith.constant 4 : index
    %194 = arith.index_cast %15 : i32 to index
    %c0_48 = arith.constant 0 : index
    %195 = vector.load %arg2[%c0_47, %c4, %194, %c0_48] : memref<1x6x16x128xbf16, #tpu.memory_space<vmem>>, vector<1x1x16x128xbf16>
    %196 = vector.shape_cast %195 : vector<1x1x16x128xbf16> to vector<16x128xbf16>
    %197 = arith.extf %196 : vector<16x128xbf16> to vector<16x128xf32>
    %198 = arith.negf %197 : vector<16x128xf32>
    %199 = math.exp %198 : vector<16x128xf32>
    %cst_49 = arith.constant 1.000000e+00 : f32
    %200 = vector.broadcast %cst_49 : f32 to vector<16x128xf32>
    %201 = arith.addf %200, %199 : vector<16x128xf32>
    %202 = arith.divf %200, %201 : vector<16x128xf32>
    %cst_50 = arith.constant 0.000000e+00 : f32
    %203 = vector.broadcast %cst_50 : f32 to vector<16x128xf32>
    %204 = arith.maximumf %197, %203 : vector<16x128xf32>
    %205 = arith.mulf %197, %160 : vector<16x128xf32>
    %206 = arith.subf %204, %205 : vector<16x128xf32>
    %cst_51 = arith.constant 1.000000e+00 : f32
    %207 = vector.broadcast %cst_51 : f32 to vector<16x128xf32>
    %208 = arith.subf %207, %202 : vector<16x128xf32>
    %209 = arith.maximumf %202, %208 : vector<16x128xf32>
    %210 = math.log %209 : vector<16x128xf32>
    %211 = arith.subf %206, %210 : vector<16x128xf32>
    %212 = arith.mulf %160, %202 : vector<16x128xf32>
    %cst_52 = arith.constant 1.000000e+00 : f32
    %213 = vector.broadcast %cst_52 : f32 to vector<16x128xf32>
    %214 = arith.subf %213, %160 : vector<16x128xf32>
    %cst_53 = arith.constant 1.000000e+00 : f32
    %215 = vector.broadcast %cst_53 : f32 to vector<16x128xf32>
    %216 = arith.subf %215, %202 : vector<16x128xf32>
    %217 = arith.mulf %214, %216 : vector<16x128xf32>
    %218 = arith.addf %212, %217 : vector<16x128xf32>
    %cst_54 = arith.constant 1.000000e+00 : f32
    %219 = vector.broadcast %cst_54 : f32 to vector<16x128xf32>
    %220 = arith.subf %219, %218 : vector<16x128xf32>
    %221 = arith.mulf %220, %220 : vector<16x128xf32>
    %222 = arith.mulf %221, %211 : vector<16x128xf32>
    %223 = arith.addf %193, %222 : vector<16x128xf32>
    %cst_55 = arith.constant 0.000000e+00 : f32
    %224 = vector.broadcast %cst_55 : f32 to vector<16x128xf32>
    %225 = arith.maximumf %132, %224 : vector<16x128xf32>
    %226 = arith.mulf %132, %162 : vector<16x128xf32>
    %227 = arith.subf %225, %226 : vector<16x128xf32>
    %cst_56 = arith.constant 1.000000e+00 : f32
    %228 = vector.broadcast %cst_56 : f32 to vector<16x128xf32>
    %229 = arith.subf %228, %137 : vector<16x128xf32>
    %230 = arith.maximumf %137, %229 : vector<16x128xf32>
    %231 = math.log %230 : vector<16x128xf32>
    %232 = arith.subf %227, %231 : vector<16x128xf32>
    %233 = arith.mulf %162, %137 : vector<16x128xf32>
    %cst_57 = arith.constant 1.000000e+00 : f32
    %234 = vector.broadcast %cst_57 : f32 to vector<16x128xf32>
    %235 = arith.subf %234, %162 : vector<16x128xf32>
    %cst_58 = arith.constant 1.000000e+00 : f32
    %236 = vector.broadcast %cst_58 : f32 to vector<16x128xf32>
    %237 = arith.subf %236, %137 : vector<16x128xf32>
    %238 = arith.mulf %235, %237 : vector<16x128xf32>
    %239 = arith.addf %233, %238 : vector<16x128xf32>
    %cst_59 = arith.constant 1.000000e+00 : f32
    %240 = vector.broadcast %cst_59 : f32 to vector<16x128xf32>
    %241 = arith.subf %240, %239 : vector<16x128xf32>
    %242 = arith.mulf %241, %241 : vector<16x128xf32>
    %243 = arith.mulf %242, %232 : vector<16x128xf32>
    %244 = arith.addf %223, %243 : vector<16x128xf32>
    %245 = arith.mulf %244, %35 : vector<16x128xf32>
    %246 = vector.extract_strided_slice %245 {offsets = [0, 0], sizes = [8, 128], strides = [1, 1]} : vector<16x128xf32> to vector<8x128xf32>
    %247 = vector.extract_strided_slice %245 {offsets = [8, 0], sizes = [8, 128], strides = [1, 1]} : vector<16x128xf32> to vector<8x128xf32>
    %248 = arith.addf %246, %247 : vector<8x128xf32>
    %249 = arith.addf %13, %248 : vector<8x128xf32>
    %c1_i32 = arith.constant 1 : i32
    %250 = vector.shape_cast %55 : vector<8x128xf32> to vector<1x8x128xf32>
    %cst_60 = arith.constant dense<0.000000e+00> : vector<1xf32>
    %251 = vector.multi_reduction <add>, %250, %cst_60 [1, 2] : vector<1x8x128xf32> to vector<1xf32>
    %252 = vector.shape_cast %251 : vector<1xf32> to vector<1x1x1xf32>
    %253 = vector.extract %252[0, 0, 0] : f32 from vector<1x1x1xf32>
    %254 = vector.broadcast %253 : f32 to vector<1x1xf32>
    %cst_61 = arith.constant 1.000000e+00 : f32
    %255 = vector.broadcast %cst_61 : f32 to vector<1x1xf32>
    %256 = arith.maximumf %254, %255 : vector<1x1xf32>
    %cst_62 = arith.constant 1.000000e+00 : f32
    %257 = vector.broadcast %cst_62 : f32 to vector<1x1xf32>
    %258 = arith.divf %257, %256 : vector<1x1xf32>
    %259 = vector.shape_cast %60 : vector<8x128xf32> to vector<1x8x128xf32>
    %cst_63 = arith.constant dense<0.000000e+00> : vector<1xf32>
    %260 = vector.multi_reduction <add>, %259, %cst_63 [1, 2] : vector<1x8x128xf32> to vector<1xf32>
    %261 = vector.shape_cast %260 : vector<1xf32> to vector<1x1x1xf32>
    %262 = vector.extract %261[0, 0, 0] : f32 from vector<1x1x1xf32>
    %263 = vector.broadcast %262 : f32 to vector<1x1xf32>
    %264 = arith.mulf %263, %258 : vector<1x1xf32>
    %265 = vector.shape_cast %65 : vector<8x128xf32> to vector<1x8x128xf32>
    %cst_64 = arith.constant dense<0.000000e+00> : vector<1xf32>
    %266 = vector.multi_reduction <add>, %265, %cst_64 [1, 2] : vector<1x8x128xf32> to vector<1xf32>
    %267 = vector.shape_cast %266 : vector<1xf32> to vector<1x1x1xf32>
    %268 = vector.extract %267[0, 0, 0] : f32 from vector<1x1x1xf32>
    %269 = vector.broadcast %268 : f32 to vector<1x1xf32>
    %270 = arith.mulf %269, %258 : vector<1x1xf32>
    %271 = vector.shape_cast %70 : vector<8x128xf32> to vector<1x8x128xf32>
    %cst_65 = arith.constant dense<0.000000e+00> : vector<1xf32>
    %272 = vector.multi_reduction <add>, %271, %cst_65 [1, 2] : vector<1x8x128xf32> to vector<1xf32>
    %273 = vector.shape_cast %272 : vector<1xf32> to vector<1x1x1xf32>
    %274 = vector.extract %273[0, 0, 0] : f32 from vector<1x1x1xf32>
    %275 = vector.broadcast %274 : f32 to vector<1x1xf32>
    %276 = arith.mulf %275, %258 : vector<1x1xf32>
    %cst_66 = arith.constant 1.000000e+01 : f32
    %277 = vector.broadcast %cst_66 : f32 to vector<1x1xf32>
    %278 = arith.mulf %277, %276 : vector<1x1xf32>
    %279 = math.exp %278 : vector<1x1xf32>
    %280 = vector.shape_cast %78 : vector<8x128xf32> to vector<1x8x128xf32>
    %cst_67 = arith.constant dense<0.000000e+00> : vector<1xf32>
    %281 = vector.multi_reduction <add>, %280, %cst_67 [1, 2] : vector<1x8x128xf32> to vector<1xf32>
    %282 = vector.shape_cast %281 : vector<1xf32> to vector<1x1x1xf32>
    %283 = vector.extract %282[0, 0, 0] : f32 from vector<1x1x1xf32>
    %284 = vector.broadcast %283 : f32 to vector<1x1xf32>
    %cst_68 = arith.constant 1.000000e+00 : f32
    %285 = vector.broadcast %cst_68 : f32 to vector<1x1xf32>
    %286 = arith.maximumf %284, %285 : vector<1x1xf32>
    %cst_69 = arith.constant 1.000000e+00 : f32
    %287 = vector.broadcast %cst_69 : f32 to vector<1x1xf32>
    %288 = arith.divf %287, %286 : vector<1x1xf32>
    %289 = vector.shape_cast %83 : vector<8x128xf32> to vector<1x8x128xf32>
    %cst_70 = arith.constant dense<0.000000e+00> : vector<1xf32>
    %290 = vector.multi_reduction <add>, %289, %cst_70 [1, 2] : vector<1x8x128xf32> to vector<1xf32>
    %291 = vector.shape_cast %290 : vector<1xf32> to vector<1x1x1xf32>
    %292 = vector.extract %291[0, 0, 0] : f32 from vector<1x1x1xf32>
    %293 = vector.broadcast %292 : f32 to vector<1x1xf32>
    %294 = arith.mulf %293, %288 : vector<1x1xf32>
    %295 = vector.shape_cast %88 : vector<8x128xf32> to vector<1x8x128xf32>
    %cst_71 = arith.constant dense<0.000000e+00> : vector<1xf32>
    %296 = vector.multi_reduction <add>, %295, %cst_71 [1, 2] : vector<1x8x128xf32> to vector<1xf32>
    %297 = vector.shape_cast %296 : vector<1xf32> to vector<1x1x1xf32>
    %298 = vector.extract %297[0, 0, 0] : f32 from vector<1x1x1xf32>
    %299 = vector.broadcast %298 : f32 to vector<1x1xf32>
    %300 = arith.mulf %299, %288 : vector<1x1xf32>
    %301 = vector.shape_cast %93 : vector<8x128xf32> to vector<1x8x128xf32>
    %cst_72 = arith.constant dense<0.000000e+00> : vector<1xf32>
    %302 = vector.multi_reduction <add>, %301, %cst_72 [1, 2] : vector<1x8x128xf32> to vector<1xf32>
    %303 = vector.shape_cast %302 : vector<1xf32> to vector<1x1x1xf32>
    %304 = vector.extract %303[0, 0, 0] : f32 from vector<1x1x1xf32>
    %305 = vector.broadcast %304 : f32 to vector<1x1xf32>
    %306 = arith.mulf %305, %288 : vector<1x1xf32>
    %cst_73 = arith.constant 1.000000e+01 : f32
    %307 = vector.broadcast %cst_73 : f32 to vector<1x1xf32>
    %308 = arith.mulf %307, %306 : vector<1x1xf32>
    %309 = math.exp %308 : vector<1x1xf32>
    %310 = vector.shape_cast %101 : vector<8x128xf32> to vector<1x8x128xf32>
    %cst_74 = arith.constant dense<0.000000e+00> : vector<1xf32>
    %311 = vector.multi_reduction <add>, %310, %cst_74 [1, 2] : vector<1x8x128xf32> to vector<1xf32>
    %312 = vector.shape_cast %311 : vector<1xf32> to vector<1x1x1xf32>
    %313 = vector.extract %312[0, 0, 0] : f32 from vector<1x1x1xf32>
    %314 = vector.broadcast %313 : f32 to vector<1x1xf32>
    %cst_75 = arith.constant 1.000000e+00 : f32
    %315 = vector.broadcast %cst_75 : f32 to vector<1x1xf32>
    %316 = arith.maximumf %314, %315 : vector<1x1xf32>
    %cst_76 = arith.constant 1.000000e+00 : f32
    %317 = vector.broadcast %cst_76 : f32 to vector<1x1xf32>
    %318 = arith.divf %317, %316 : vector<1x1xf32>
    %319 = vector.shape_cast %106 : vector<8x128xf32> to vector<1x8x128xf32>
    %cst_77 = arith.constant dense<0.000000e+00> : vector<1xf32>
    %320 = vector.multi_reduction <add>, %319, %cst_77 [1, 2] : vector<1x8x128xf32> to vector<1xf32>
    %321 = vector.shape_cast %320 : vector<1xf32> to vector<1x1x1xf32>
    %322 = vector.extract %321[0, 0, 0] : f32 from vector<1x1x1xf32>
    %323 = vector.broadcast %322 : f32 to vector<1x1xf32>
    %324 = arith.mulf %323, %318 : vector<1x1xf32>
    %325 = vector.shape_cast %111 : vector<8x128xf32> to vector<1x8x128xf32>
    %cst_78 = arith.constant dense<0.000000e+00> : vector<1xf32>
    %326 = vector.multi_reduction <add>, %325, %cst_78 [1, 2] : vector<1x8x128xf32> to vector<1xf32>
    %327 = vector.shape_cast %326 : vector<1xf32> to vector<1x1x1xf32>
    %328 = vector.extract %327[0, 0, 0] : f32 from vector<1x1x1xf32>
    %329 = vector.broadcast %328 : f32 to vector<1x1xf32>
    %330 = arith.mulf %329, %318 : vector<1x1xf32>
    %331 = vector.shape_cast %116 : vector<8x128xf32> to vector<1x8x128xf32>
    %cst_79 = arith.constant dense<0.000000e+00> : vector<1xf32>
    %332 = vector.multi_reduction <add>, %331, %cst_79 [1, 2] : vector<1x8x128xf32> to vector<1xf32>
    %333 = vector.shape_cast %332 : vector<1xf32> to vector<1x1x1xf32>
    %334 = vector.extract %333[0, 0, 0] : f32 from vector<1x1x1xf32>
    %335 = vector.broadcast %334 : f32 to vector<1x1xf32>
    %336 = arith.mulf %335, %318 : vector<1x1xf32>
    %cst_80 = arith.constant 1.000000e+01 : f32
    %337 = vector.broadcast %cst_80 : f32 to vector<1x1xf32>
    %338 = arith.mulf %337, %336 : vector<1x1xf32>
    %339 = math.exp %338 : vector<1x1xf32>
    %c0_i32_81 = arith.constant 0 : i32
    %c1_i32_82 = arith.constant 1 : i32
    %340 = arith.muli %c0_i32_81, %c1_i32_82 : i32
    %c0_i32_83 = arith.constant 0 : i32
    %341 = arith.addi %c0_i32_83, %340 : i32
    %c16_i32_84 = arith.constant 16 : i32
    %342 = arith.muli %341, %c16_i32_84 : i32
    %343 = tpu.assume_multiple %342, 16 : i32
    %344 = tpu.iota {dimensions = array<i32: 0>} : vector<16x128xi32>
    %345 = vector.broadcast %343 : i32 to vector<16x128xi32>
    %346 = arith.addi %344, %345 : vector<16x128xi32>
    %347 = tpu.iota {dimensions = array<i32: 1>} : vector<16x128xi32>
    %c128_i32_85 = arith.constant 128 : i32
    %348 = vector.broadcast %c128_i32_85 : i32 to vector<16x128xi32>
    %349 = arith.muli %346, %348 : vector<16x128xi32>
    %350 = arith.addi %349, %347 : vector<16x128xi32>
    %351 = arith.sitofp %350 : vector<16x128xi32> to vector<16x128xf32>
    %cst_86 = arith.constant 5.000000e-01 : f32
    %352 = vector.broadcast %cst_86 : f32 to vector<16x128xf32>
    %353 = arith.addf %351, %352 : vector<16x128xf32>
    %cst_87 = arith.constant 6.250000e-02 : f32
    %354 = vector.broadcast %cst_87 : f32 to vector<16x128xf32>
    %355 = arith.mulf %353, %354 : vector<16x128xf32>
    %356 = math.floor %355 : vector<16x128xf32>
    %cst_88 = arith.constant 1.600000e+01 : f32
    %357 = vector.broadcast %cst_88 : f32 to vector<16x128xf32>
    %358 = arith.mulf %356, %357 : vector<16x128xf32>
    %359 = arith.subf %351, %358 : vector<16x128xf32>
    %cst_89 = arith.constant 2.560000e+02 : f32
    %360 = vector.broadcast %cst_89 : f32 to vector<16x128xf32>
    %361 = arith.cmpf olt, %351, %360 : vector<16x128xf32>
    %362 = arith.extui %361 : vector<16x128xi1> to vector<16x128xi32>
    %363 = arith.sitofp %362 : vector<16x128xi32> to vector<16x128xf32>
    %cst_90 = arith.constant 0.0666666701 : f32
    %364 = vector.broadcast %cst_90 : f32 to vector<16x128xf32>
    %365 = arith.mulf %359, %364 : vector<16x128xf32>
    %cst_91 = arith.constant 0.0666666701 : f32
    %366 = vector.broadcast %cst_91 : f32 to vector<16x128xf32>
    %367 = arith.mulf %356, %366 : vector<16x128xf32>
    %c0_92 = arith.constant 0 : index
    %c0_93 = arith.constant 0 : index
    %368 = arith.index_cast %343 : i32 to index
    %c0_94 = arith.constant 0 : index
    %369 = vector.load %arg2[%c0_92, %c0_93, %368, %c0_94] : memref<1x6x16x128xbf16, #tpu.memory_space<vmem>>, vector<1x1x16x128xbf16>
    %370 = vector.shape_cast %369 : vector<1x1x16x128xbf16> to vector<16x128xbf16>
    %371 = arith.extf %370 : vector<16x128xbf16> to vector<16x128xf32>
    %372 = math.tanh %371 : vector<16x128xf32>
    %373 = arith.addf %372, %365 : vector<16x128xf32>
    %c0_95 = arith.constant 0 : index
    %c1_96 = arith.constant 1 : index
    %374 = arith.index_cast %343 : i32 to index
    %c0_97 = arith.constant 0 : index
    %375 = vector.load %arg2[%c0_95, %c1_96, %374, %c0_97] : memref<1x6x16x128xbf16, #tpu.memory_space<vmem>>, vector<1x1x16x128xbf16>
    %376 = vector.shape_cast %375 : vector<1x1x16x128xbf16> to vector<16x128xbf16>
    %377 = arith.extf %376 : vector<16x128xbf16> to vector<16x128xf32>
    %378 = math.tanh %377 : vector<16x128xf32>
    %379 = arith.addf %378, %367 : vector<16x128xf32>
    %c0_98 = arith.constant 0 : index
    %c2_99 = arith.constant 2 : index
    %380 = arith.index_cast %343 : i32 to index
    %c0_100 = arith.constant 0 : index
    %381 = vector.load %arg2[%c0_98, %c2_99, %380, %c0_100] : memref<1x6x16x128xbf16, #tpu.memory_space<vmem>>, vector<1x1x16x128xbf16>
    %382 = vector.shape_cast %381 : vector<1x1x16x128xbf16> to vector<16x128xbf16>
    %383 = arith.extf %382 : vector<16x128xbf16> to vector<16x128xf32>
    %c0_101 = arith.constant 0 : index
    %c5_102 = arith.constant 5 : index
    %384 = arith.index_cast %343 : i32 to index
    %c0_103 = arith.constant 0 : index
    %385 = vector.load %arg2[%c0_101, %c5_102, %384, %c0_103] : memref<1x6x16x128xbf16, #tpu.memory_space<vmem>>, vector<1x1x16x128xbf16>
    %386 = vector.shape_cast %385 : vector<1x1x16x128xbf16> to vector<16x128xbf16>
    %387 = arith.extf %386 : vector<16x128xbf16> to vector<16x128xf32>
    %388 = arith.negf %387 : vector<16x128xf32>
    %389 = math.exp %388 : vector<16x128xf32>
    %cst_104 = arith.constant 1.000000e+00 : f32
    %390 = vector.broadcast %cst_104 : f32 to vector<16x128xf32>
    %391 = arith.addf %390, %389 : vector<16x128xf32>
    %392 = arith.divf %390, %391 : vector<16x128xf32>
    %c0_105 = arith.constant 0 : index
    %393 = arith.index_cast %343 : i32 to index
    %c0_106 = arith.constant 0 : index
    %394 = vector.load %arg4[%c0_105, %393, %c0_106] : memref<1x16x128xbf16, #tpu.memory_space<vmem>>, vector<1x16x128xbf16>
    %395 = vector.shape_cast %394 : vector<1x16x128xbf16> to vector<16x128xbf16>
    %396 = arith.extf %395 : vector<16x128xbf16> to vector<16x128xf32>
    %397 = arith.extui %6 : i1 to i32
    %c0_i32_107 = arith.constant 0 : i32
    %398 = arith.cmpi ne, %397, %c0_i32_107 : i32
    scf.if %398 {
      %cst_133 = arith.constant 1.000000e+00 : f32
      %461 = vector.broadcast %cst_133 : f32 to vector<16x128xf32>
      %462 = arith.cmpf oeq, %396, %461 : vector<16x128xf32>
      %463 = arith.extui %462 : vector<16x128xi1> to vector<16x128xi32>
      %464 = arith.sitofp %463 : vector<16x128xi32> to vector<16x128xf32>
      %465 = vector.broadcast %264 : vector<1x1xf32> to vector<16x128xf32>
      %466 = arith.subf %373, %465 : vector<16x128xf32>
      %467 = vector.broadcast %270 : vector<1x1xf32> to vector<16x128xf32>
      %468 = arith.subf %379, %467 : vector<16x128xf32>
      %469 = arith.mulf %466, %466 : vector<16x128xf32>
      %470 = arith.mulf %468, %468 : vector<16x128xf32>
      %471 = arith.addf %469, %470 : vector<16x128xf32>
      %cst_134 = arith.constant 0.000000e+00 : f32
      %472 = vector.broadcast %cst_134 : f32 to vector<16x128xf32>
      %473 = arith.subf %472, %471 : vector<16x128xf32>
      %474 = vector.broadcast %279 : vector<1x1xf32> to vector<16x128xf32>
      %475 = arith.mulf %473, %474 : vector<16x128xf32>
      %476 = math.exp %475 : vector<16x128xf32>
      %cst_135 = arith.constant 2.000000e+00 : f32
      %477 = vector.broadcast %cst_135 : f32 to vector<16x128xf32>
      %478 = arith.mulf %477, %476 : vector<16x128xf32>
      %479 = arith.mulf %478, %363 : vector<16x128xf32>
      %cst_136 = arith.constant 1.000000e+00 : f32
      %480 = vector.broadcast %cst_136 : f32 to vector<16x128xf32>
      %481 = arith.subf %479, %480 : vector<16x128xf32>
      %482 = arith.truncf %481 : vector<16x128xf32> to vector<16x128xbf16>
      %c0_137 = arith.constant 0 : index
      %c0_138 = arith.constant 0 : index
      %483 = arith.index_cast %343 : i32 to index
      %c0_139 = arith.constant 0 : index
      %484 = vector.load %arg5[%c0_137, %c0_138, %483, %c0_139] : memref<1x3x16x128xbf16, #tpu.memory_space<vmem>>, vector<1x1x16x128xbf16>
      %485 = vector.shape_cast %484 : vector<1x1x16x128xbf16> to vector<16x128xbf16>
      %486 = vector.shape_cast %482 : vector<16x128xbf16> to vector<1x1x16x128xbf16>
      tpu.vector_store %arg5[%c0_137, %c0_138, %483, %c0_139], %486 {strides = array<i32>} : memref<1x3x16x128xbf16, #tpu.memory_space<vmem>>, vector<1x1x16x128xbf16>,
      %487 = arith.subf %392, %476 : vector<16x128xf32>
      %c0_140 = arith.constant 0 : index
      %c0_141 = arith.constant 0 : index
      %488 = vector.load %arg7[%c0_140, %c0_141] : memref<8x128xf32, #tpu.memory_space<vmem>>, vector<8x128xf32>
      %489 = arith.mulf %464, %487 : vector<16x128xf32>
      %490 = arith.mulf %489, %487 : vector<16x128xf32>
      %491 = vector.extract_strided_slice %490 {offsets = [0, 0], sizes = [8, 128], strides = [1, 1]} : vector<16x128xf32> to vector<8x128xf32>
      %492 = vector.extract_strided_slice %490 {offsets = [8, 0], sizes = [8, 128], strides = [1, 1]} : vector<16x128xf32> to vector<8x128xf32>
      %493 = arith.addf %491, %492 : vector<8x128xf32>
      %494 = arith.addf %488, %493 : vector<8x128xf32>
      %c0_142 = arith.constant 0 : index
      %c0_143 = arith.constant 0 : index
      %495 = vector.load %arg7[%c0_142, %c0_143] : memref<8x128xf32, #tpu.memory_space<vmem>>, vector<8x128xf32>
      tpu.vector_store %arg7[%c0_142, %c0_143], %494 {strides = array<i32>} : memref<8x128xf32, #tpu.memory_space<vmem>>, vector<8x128xf32>,
      %496 = vector.broadcast %276 : vector<1x1xf32> to vector<16x128xf32>
      %497 = arith.subf %383, %496 : vector<16x128xf32>
      %c0_144 = arith.constant 0 : index
      %c0_145 = arith.constant 0 : index
      %498 = vector.load %arg8[%c0_144, %c0_145] : memref<8x128xf32, #tpu.memory_space<vmem>>, vector<8x128xf32>
      %499 = arith.mulf %464, %497 : vector<16x128xf32>
      %500 = arith.mulf %499, %497 : vector<16x128xf32>
      %501 = vector.extract_strided_slice %500 {offsets = [0, 0], sizes = [8, 128], strides = [1, 1]} : vector<16x128xf32> to vector<8x128xf32>
      %502 = vector.extract_strided_slice %500 {offsets = [8, 0], sizes = [8, 128], strides = [1, 1]} : vector<16x128xf32> to vector<8x128xf32>
      %503 = arith.addf %501, %502 : vector<8x128xf32>
      %504 = vector.broadcast %258 : vector<1x1xf32> to vector<8x128xf32>
      %505 = arith.mulf %503, %504 : vector<8x128xf32>
      %506 = arith.addf %498, %505 : vector<8x128xf32>
      %c0_146 = arith.constant 0 : index
      %c0_147 = arith.constant 0 : index
      %507 = vector.load %arg8[%c0_146, %c0_147] : memref<8x128xf32, #tpu.memory_space<vmem>>, vector<8x128xf32>
      tpu.vector_store %arg8[%c0_146, %c0_147], %506 {strides = array<i32>} : memref<8x128xf32, #tpu.memory_space<vmem>>, vector<8x128xf32>,
    } else {
    }
    %true = arith.constant true
    %399 = arith.xori %6, %true : i1
    %400 = arith.extui %399 : i1 to i32
    %c0_i32_108 = arith.constant 0 : i32
    %401 = arith.cmpi ne, %400, %c0_i32_108 : i32
    scf.if %401 {
      %cst_133 = arith.constant -1.000000e+00 : bf16
      %461 = vector.broadcast %cst_133 : bf16 to vector<16x128xbf16>
      %c0_134 = arith.constant 0 : index
      %c0_135 = arith.constant 0 : index
      %462 = arith.index_cast %343 : i32 to index
      %c0_136 = arith.constant 0 : index
      %463 = vector.load %arg5[%c0_134, %c0_135, %462, %c0_136] : memref<1x3x16x128xbf16, #tpu.memory_space<vmem>>, vector<1x1x16x128xbf16>
      %464 = vector.shape_cast %463 : vector<1x1x16x128xbf16> to vector<16x128xbf16>
      %465 = vector.shape_cast %461 : vector<16x128xbf16> to vector<1x1x16x128xbf16>
      tpu.vector_store %arg5[%c0_134, %c0_135, %462, %c0_136], %465 {strides = array<i32>} : memref<1x3x16x128xbf16, #tpu.memory_space<vmem>>, vector<1x1x16x128xbf16>,
    } else {
    }
    %402 = arith.extui %9 : i1 to i32
    %c0_i32_109 = arith.constant 0 : i32
    %403 = arith.cmpi ne, %402, %c0_i32_109 : i32
    scf.if %403 {
      %cst_133 = arith.constant 2.000000e+00 : f32
      %461 = vector.broadcast %cst_133 : f32 to vector<16x128xf32>
      %462 = arith.cmpf oeq, %396, %461 : vector<16x128xf32>
      %463 = arith.extui %462 : vector<16x128xi1> to vector<16x128xi32>
      %464 = arith.sitofp %463 : vector<16x128xi32> to vector<16x128xf32>
      %465 = vector.broadcast %294 : vector<1x1xf32> to vector<16x128xf32>
      %466 = arith.subf %373, %465 : vector<16x128xf32>
      %467 = vector.broadcast %300 : vector<1x1xf32> to vector<16x128xf32>
      %468 = arith.subf %379, %467 : vector<16x128xf32>
      %469 = arith.mulf %466, %466 : vector<16x128xf32>
      %470 = arith.mulf %468, %468 : vector<16x128xf32>
      %471 = arith.addf %469, %470 : vector<16x128xf32>
      %cst_134 = arith.constant 0.000000e+00 : f32
      %472 = vector.broadcast %cst_134 : f32 to vector<16x128xf32>
      %473 = arith.subf %472, %471 : vector<16x128xf32>
      %474 = vector.broadcast %309 : vector<1x1xf32> to vector<16x128xf32>
      %475 = arith.mulf %473, %474 : vector<16x128xf32>
      %476 = math.exp %475 : vector<16x128xf32>
      %cst_135 = arith.constant 2.000000e+00 : f32
      %477 = vector.broadcast %cst_135 : f32 to vector<16x128xf32>
      %478 = arith.mulf %477, %476 : vector<16x128xf32>
      %479 = arith.mulf %478, %363 : vector<16x128xf32>
      %cst_136 = arith.constant 1.000000e+00 : f32
      %480 = vector.broadcast %cst_136 : f32 to vector<16x128xf32>
      %481 = arith.subf %479, %480 : vector<16x128xf32>
      %482 = arith.truncf %481 : vector<16x128xf32> to vector<16x128xbf16>
      %c0_137 = arith.constant 0 : index
      %c1_138 = arith.constant 1 : index
      %483 = arith.index_cast %343 : i32 to index
      %c0_139 = arith.constant 0 : index
      %484 = vector.load %arg5[%c0_137, %c1_138, %483, %c0_139] : memref<1x3x16x128xbf16, #tpu.memory_space<vmem>>, vector<1x1x16x128xbf16>
      %485 = vector.shape_cast %484 : vector<1x1x16x128xbf16> to vector<16x128xbf16>
      %486 = vector.shape_cast %482 : vector<16x128xbf16> to vector<1x1x16x128xbf16>
      tpu.vector_store %arg5[%c0_137, %c1_138, %483, %c0_139], %486 {strides = array<i32>} : memref<1x3x16x128xbf16, #tpu.memory_space<vmem>>, vector<1x1x16x128xbf16>,
      %487 = arith.subf %392, %476 : vector<16x128xf32>
      %c0_140 = arith.constant 0 : index
      %c0_141 = arith.constant 0 : index
      %488 = vector.load %arg7[%c0_140, %c0_141] : memref<8x128xf32, #tpu.memory_space<vmem>>, vector<8x128xf32>
      %489 = arith.mulf %464, %487 : vector<16x128xf32>
      %490 = arith.mulf %489, %487 : vector<16x128xf32>
      %491 = vector.extract_strided_slice %490 {offsets = [0, 0], sizes = [8, 128], strides = [1, 1]} : vector<16x128xf32> to vector<8x128xf32>
      %492 = vector.extract_strided_slice %490 {offsets = [8, 0], sizes = [8, 128], strides = [1, 1]} : vector<16x128xf32> to vector<8x128xf32>
      %493 = arith.addf %491, %492 : vector<8x128xf32>
      %494 = arith.addf %488, %493 : vector<8x128xf32>
      %c0_142 = arith.constant 0 : index
      %c0_143 = arith.constant 0 : index
      %495 = vector.load %arg7[%c0_142, %c0_143] : memref<8x128xf32, #tpu.memory_space<vmem>>, vector<8x128xf32>
      tpu.vector_store %arg7[%c0_142, %c0_143], %494 {strides = array<i32>} : memref<8x128xf32, #tpu.memory_space<vmem>>, vector<8x128xf32>,
      %496 = vector.broadcast %306 : vector<1x1xf32> to vector<16x128xf32>
      %497 = arith.subf %383, %496 : vector<16x128xf32>
      %c0_144 = arith.constant 0 : index
      %c0_145 = arith.constant 0 : index
      %498 = vector.load %arg8[%c0_144, %c0_145] : memref<8x128xf32, #tpu.memory_space<vmem>>, vector<8x128xf32>
      %499 = arith.mulf %464, %497 : vector<16x128xf32>
      %500 = arith.mulf %499, %497 : vector<16x128xf32>
      %501 = vector.extract_strided_slice %500 {offsets = [0, 0], sizes = [8, 128], strides = [1, 1]} : vector<16x128xf32> to vector<8x128xf32>
      %502 = vector.extract_strided_slice %500 {offsets = [8, 0], sizes = [8, 128], strides = [1, 1]} : vector<16x128xf32> to vector<8x128xf32>
      %503 = arith.addf %501, %502 : vector<8x128xf32>
      %504 = vector.broadcast %288 : vector<1x1xf32> to vector<8x128xf32>
      %505 = arith.mulf %503, %504 : vector<8x128xf32>
      %506 = arith.addf %498, %505 : vector<8x128xf32>
      %c0_146 = arith.constant 0 : index
      %c0_147 = arith.constant 0 : index
      %507 = vector.load %arg8[%c0_146, %c0_147] : memref<8x128xf32, #tpu.memory_space<vmem>>, vector<8x128xf32>
      tpu.vector_store %arg8[%c0_146, %c0_147], %506 {strides = array<i32>} : memref<8x128xf32, #tpu.memory_space<vmem>>, vector<8x128xf32>,
    } else {
    }
    %true_110 = arith.constant true
    %404 = arith.xori %9, %true_110 : i1
    %405 = arith.extui %404 : i1 to i32
    %c0_i32_111 = arith.constant 0 : i32
    %406 = arith.cmpi ne, %405, %c0_i32_111 : i32
    scf.if %406 {
      %cst_133 = arith.constant -1.000000e+00 : bf16
      %461 = vector.broadcast %cst_133 : bf16 to vector<16x128xbf16>
      %c0_134 = arith.constant 0 : index
      %c1_135 = arith.constant 1 : index
      %462 = arith.index_cast %343 : i32 to index
      %c0_136 = arith.constant 0 : index
      %463 = vector.load %arg5[%c0_134, %c1_135, %462, %c0_136] : memref<1x3x16x128xbf16, #tpu.memory_space<vmem>>, vector<1x1x16x128xbf16>
      %464 = vector.shape_cast %463 : vector<1x1x16x128xbf16> to vector<16x128xbf16>
      %465 = vector.shape_cast %461 : vector<16x128xbf16> to vector<1x1x16x128xbf16>
      tpu.vector_store %arg5[%c0_134, %c1_135, %462, %c0_136], %465 {strides = array<i32>} : memref<1x3x16x128xbf16, #tpu.memory_space<vmem>>, vector<1x1x16x128xbf16>,
    } else {
    }
    %407 = arith.extui %12 : i1 to i32
    %c0_i32_112 = arith.constant 0 : i32
    %408 = arith.cmpi ne, %407, %c0_i32_112 : i32
    scf.if %408 {
      %cst_133 = arith.constant 3.000000e+00 : f32
      %461 = vector.broadcast %cst_133 : f32 to vector<16x128xf32>
      %462 = arith.cmpf oeq, %396, %461 : vector<16x128xf32>
      %463 = arith.extui %462 : vector<16x128xi1> to vector<16x128xi32>
      %464 = arith.sitofp %463 : vector<16x128xi32> to vector<16x128xf32>
      %465 = vector.broadcast %324 : vector<1x1xf32> to vector<16x128xf32>
      %466 = arith.subf %373, %465 : vector<16x128xf32>
      %467 = vector.broadcast %330 : vector<1x1xf32> to vector<16x128xf32>
      %468 = arith.subf %379, %467 : vector<16x128xf32>
      %469 = arith.mulf %466, %466 : vector<16x128xf32>
      %470 = arith.mulf %468, %468 : vector<16x128xf32>
      %471 = arith.addf %469, %470 : vector<16x128xf32>
      %cst_134 = arith.constant 0.000000e+00 : f32
      %472 = vector.broadcast %cst_134 : f32 to vector<16x128xf32>
      %473 = arith.subf %472, %471 : vector<16x128xf32>
      %474 = vector.broadcast %339 : vector<1x1xf32> to vector<16x128xf32>
      %475 = arith.mulf %473, %474 : vector<16x128xf32>
      %476 = math.exp %475 : vector<16x128xf32>
      %cst_135 = arith.constant 2.000000e+00 : f32
      %477 = vector.broadcast %cst_135 : f32 to vector<16x128xf32>
      %478 = arith.mulf %477, %476 : vector<16x128xf32>
      %479 = arith.mulf %478, %363 : vector<16x128xf32>
      %cst_136 = arith.constant 1.000000e+00 : f32
      %480 = vector.broadcast %cst_136 : f32 to vector<16x128xf32>
      %481 = arith.subf %479, %480 : vector<16x128xf32>
      %482 = arith.truncf %481 : vector<16x128xf32> to vector<16x128xbf16>
      %c0_137 = arith.constant 0 : index
      %c2_138 = arith.constant 2 : index
      %483 = arith.index_cast %343 : i32 to index
      %c0_139 = arith.constant 0 : index
      %484 = vector.load %arg5[%c0_137, %c2_138, %483, %c0_139] : memref<1x3x16x128xbf16, #tpu.memory_space<vmem>>, vector<1x1x16x128xbf16>
      %485 = vector.shape_cast %484 : vector<1x1x16x128xbf16> to vector<16x128xbf16>
      %486 = vector.shape_cast %482 : vector<16x128xbf16> to vector<1x1x16x128xbf16>
      tpu.vector_store %arg5[%c0_137, %c2_138, %483, %c0_139], %486 {strides = array<i32>} : memref<1x3x16x128xbf16, #tpu.memory_space<vmem>>, vector<1x1x16x128xbf16>,
      %487 = arith.subf %392, %476 : vector<16x128xf32>
      %c0_140 = arith.constant 0 : index
      %c0_141 = arith.constant 0 : index
      %488 = vector.load %arg7[%c0_140, %c0_141] : memref<8x128xf32, #tpu.memory_space<vmem>>, vector<8x128xf32>
      %489 = arith.mulf %464, %487 : vector<16x128xf32>
      %490 = arith.mulf %489, %487 : vector<16x128xf32>
      %491 = vector.extract_strided_slice %490 {offsets = [0, 0], sizes = [8, 128], strides = [1, 1]} : vector<16x128xf32> to vector<8x128xf32>
      %492 = vector.extract_strided_slice %490 {offsets = [8, 0], sizes = [8, 128], strides = [1, 1]} : vector<16x128xf32> to vector<8x128xf32>
      %493 = arith.addf %491, %492 : vector<8x128xf32>
      %494 = arith.addf %488, %493 : vector<8x128xf32>
      %c0_142 = arith.constant 0 : index
      %c0_143 = arith.constant 0 : index
      %495 = vector.load %arg7[%c0_142, %c0_143] : memref<8x128xf32, #tpu.memory_space<vmem>>, vector<8x128xf32>
      tpu.vector_store %arg7[%c0_142, %c0_143], %494 {strides = array<i32>} : memref<8x128xf32, #tpu.memory_space<vmem>>, vector<8x128xf32>,
      %496 = vector.broadcast %336 : vector<1x1xf32> to vector<16x128xf32>
      %497 = arith.subf %383, %496 : vector<16x128xf32>
      %c0_144 = arith.constant 0 : index
      %c0_145 = arith.constant 0 : index
      %498 = vector.load %arg8[%c0_144, %c0_145] : memref<8x128xf32, #tpu.memory_space<vmem>>, vector<8x128xf32>
      %499 = arith.mulf %464, %497 : vector<16x128xf32>
      %500 = arith.mulf %499, %497 : vector<16x128xf32>
      %501 = vector.extract_strided_slice %500 {offsets = [0, 0], sizes = [8, 128], strides = [1, 1]} : vector<16x128xf32> to vector<8x128xf32>
      %502 = vector.extract_strided_slice %500 {offsets = [8, 0], sizes = [8, 128], strides = [1, 1]} : vector<16x128xf32> to vector<8x128xf32>
      %503 = arith.addf %501, %502 : vector<8x128xf32>
      %504 = vector.broadcast %318 : vector<1x1xf32> to vector<8x128xf32>
      %505 = arith.mulf %503, %504 : vector<8x128xf32>
      %506 = arith.addf %498, %505 : vector<8x128xf32>
      %c0_146 = arith.constant 0 : index
      %c0_147 = arith.constant 0 : index
      %507 = vector.load %arg8[%c0_146, %c0_147] : memref<8x128xf32, #tpu.memory_space<vmem>>, vector<8x128xf32>
      tpu.vector_store %arg8[%c0_146, %c0_147], %506 {strides = array<i32>} : memref<8x128xf32, #tpu.memory_space<vmem>>, vector<8x128xf32>,
    } else {
    }
    %true_113 = arith.constant true
    %409 = arith.xori %12, %true_113 : i1
    %410 = arith.extui %409 : i1 to i32
    %c0_i32_114 = arith.constant 0 : i32
    %411 = arith.cmpi ne, %410, %c0_i32_114 : i32
    scf.if %411 {
      %cst_133 = arith.constant -1.000000e+00 : bf16
      %461 = vector.broadcast %cst_133 : bf16 to vector<16x128xbf16>
      %c0_134 = arith.constant 0 : index
      %c2_135 = arith.constant 2 : index
      %462 = arith.index_cast %343 : i32 to index
      %c0_136 = arith.constant 0 : index
      %463 = vector.load %arg5[%c0_134, %c2_135, %462, %c0_136] : memref<1x3x16x128xbf16, #tpu.memory_space<vmem>>, vector<1x1x16x128xbf16>
      %464 = vector.shape_cast %463 : vector<1x1x16x128xbf16> to vector<16x128xbf16>
      %465 = vector.shape_cast %461 : vector<16x128xbf16> to vector<1x1x16x128xbf16>
      tpu.vector_store %arg5[%c0_134, %c2_135, %462, %c0_136], %465 {strides = array<i32>} : memref<1x3x16x128xbf16, #tpu.memory_space<vmem>>, vector<1x1x16x128xbf16>,
    } else {
    }
    %c1_i32_115 = arith.constant 1 : i32
    %c0_116 = arith.constant 0 : index
    %c0_117 = arith.constant 0 : index
    %412 = vector.load %arg8[%c0_116, %c0_117] : memref<8x128xf32, #tpu.memory_space<vmem>>, vector<8x128xf32>
    %413 = vector.shape_cast %412 : vector<8x128xf32> to vector<1x8x128xf32>
    %cst_118 = arith.constant dense<0.000000e+00> : vector<1xf32>
    %414 = vector.multi_reduction <add>, %413, %cst_118 [1, 2] : vector<1x8x128xf32> to vector<1xf32>
    %415 = vector.shape_cast %414 : vector<1xf32> to vector<1x1x1xf32>
    %416 = vector.extract %415[0, 0, 0] : f32 from vector<1x1x1xf32>
    %417 = vector.broadcast %416 : f32 to vector<1x1xf32>
    %418 = vector.shape_cast %148 : vector<8x128xf32> to vector<1x8x128xf32>
    %cst_119 = arith.constant dense<0.000000e+00> : vector<1xf32>
    %419 = vector.multi_reduction <add>, %418, %cst_119 [1, 2] : vector<1x8x128xf32> to vector<1xf32>
    %420 = vector.shape_cast %419 : vector<1xf32> to vector<1x1x1xf32>
    %421 = vector.extract %420[0, 0, 0] : f32 from vector<1x1x1xf32>
    %422 = vector.broadcast %421 : f32 to vector<1x1xf32>
    %c0_120 = arith.constant 0 : index
    %c0_121 = arith.constant 0 : index
    %423 = vector.load %arg7[%c0_120, %c0_121] : memref<8x128xf32, #tpu.memory_space<vmem>>, vector<8x128xf32>
    %424 = vector.shape_cast %423 : vector<8x128xf32> to vector<1x8x128xf32>
    %cst_122 = arith.constant dense<0.000000e+00> : vector<1xf32>
    %425 = vector.multi_reduction <add>, %424, %cst_122 [1, 2] : vector<1x8x128xf32> to vector<1xf32>
    %426 = vector.shape_cast %425 : vector<1xf32> to vector<1x1x1xf32>
    %427 = vector.extract %426[0, 0, 0] : f32 from vector<1x1x1xf32>
    %428 = vector.broadcast %427 : f32 to vector<1x1xf32>
    %cst_123 = arith.constant 1.000000e+00 : f32
    %429 = vector.broadcast %cst_123 : f32 to vector<1x1xf32>
    %430 = arith.mulf %429, %428 : vector<1x1xf32>
    %431 = arith.addf %422, %430 : vector<1x1xf32>
    %432 = vector.shape_cast %249 : vector<8x128xf32> to vector<1x8x128xf32>
    %cst_124 = arith.constant dense<0.000000e+00> : vector<1xf32>
    %433 = vector.multi_reduction <add>, %432, %cst_124 [1, 2] : vector<1x8x128xf32> to vector<1xf32>
    %434 = vector.shape_cast %433 : vector<1xf32> to vector<1x1x1xf32>
    %435 = vector.extract %434[0, 0, 0] : f32 from vector<1x1x1xf32>
    %436 = vector.broadcast %435 : f32 to vector<1x1xf32>
    %437 = tpu.iota {dimensions = array<i32: 0>} : vector<8x128xi32>
    %c0_i32_125 = arith.constant 0 : i32
    %438 = vector.broadcast %c0_i32_125 : i32 to vector<8x128xi32>
    %439 = arith.cmpi eq, %437, %438 : vector<8x128xi32>
    %cst_126 = arith.constant 0.000000e+00 : f32
    %440 = vector.shape_cast %417 : vector<1x1xf32> to vector<1x1xf32>
    %441 = vector.broadcast %440 : vector<1x1xf32> to vector<8x128xf32>
    %442 = vector.broadcast %cst_126 : f32 to vector<8x128xf32>
    %443 = arith.select %439, %441, %442 : vector<8x128xi1>, vector<8x128xf32>
    %c1_i32_127 = arith.constant 1 : i32
    %444 = vector.broadcast %c1_i32_127 : i32 to vector<8x128xi32>
    %445 = arith.cmpi eq, %437, %444 : vector<8x128xi32>
    %cst_128 = arith.constant 0.000000e+00 : f32
    %446 = vector.shape_cast %431 : vector<1x1xf32> to vector<1x1xf32>
    %447 = vector.broadcast %446 : vector<1x1xf32> to vector<8x128xf32>
    %448 = vector.broadcast %cst_128 : f32 to vector<8x128xf32>
    %449 = arith.select %445, %447, %448 : vector<8x128xi1>, vector<8x128xf32>
    %450 = arith.addf %443, %449 : vector<8x128xf32>
    %c2_i32 = arith.constant 2 : i32
    %451 = vector.broadcast %c2_i32 : i32 to vector<8x128xi32>
    %452 = arith.cmpi eq, %437, %451 : vector<8x128xi32>
    %cst_129 = arith.constant 0.000000e+00 : f32
    %453 = vector.shape_cast %436 : vector<1x1xf32> to vector<1x1xf32>
    %454 = vector.broadcast %453 : vector<1x1xf32> to vector<8x128xf32>
    %455 = vector.broadcast %cst_129 : f32 to vector<8x128xf32>
    %456 = arith.select %452, %454, %455 : vector<8x128xi1>, vector<8x128xf32>
    %457 = arith.addf %450, %456 : vector<8x128xf32>
    %c0_130 = arith.constant 0 : index
    %c0_131 = arith.constant 0 : index
    %c0_132 = arith.constant 0 : index
    %458 = vector.load %arg6[%c0_130, %c0_131, %c0_132] : memref<1x8x128xf32, #tpu.memory_space<vmem>>, vector<1x8x128xf32>
    %459 = vector.shape_cast %458 : vector<1x8x128xf32> to vector<8x128xf32>
    %460 = vector.shape_cast %457 : vector<8x128xf32> to vector<1x8x128xf32>
    tpu.vector_store %arg6[%c0_130, %c0_131, %c0_132], %460 {strides = array<i32>} : memref<1x8x128xf32, #tpu.memory_space<vmem>>, vector<1x8x128xf32>,
    return
  }
  func.func @transform_0(%arg0: i32, %arg1: memref<2x3xi32, #tpu.memory_space<smem>>) -> (i32, i32, i32, i32) {
    %c0_i32 = arith.constant 0 : i32
    %c0_i32_0 = arith.constant 0 : i32
    %c0_i32_1 = arith.constant 0 : i32
    %c0_i32_2 = arith.constant 0 : i32
    return %arg0, %c0_i32, %c0_i32_0, %c0_i32_1 : i32, i32, i32, i32
  }
  func.func @transform_1(%arg0: i32, %arg1: memref<2x3xi32, #tpu.memory_space<smem>>) -> (i32, i32, i32, i32) {
    %c0_i32 = arith.constant 0 : i32
    %c0_i32_0 = arith.constant 0 : i32
    %c0_i32_1 = arith.constant 0 : i32
    %c0_i32_2 = arith.constant 0 : i32
    return %arg0, %c0_i32, %c0_i32_0, %c0_i32_1 : i32, i32, i32, i32
  }
  func.func @transform_2(%arg0: i32, %arg1: memref<2x3xi32, #tpu.memory_space<smem>>) -> (i32, i32, i32) {
    %c0_i32 = arith.constant 0 : i32
    %c0_i32_0 = arith.constant 0 : i32
    %c0_i32_1 = arith.constant 0 : i32
    return %arg0, %c0_i32, %c0_i32_0 : i32, i32, i32
  }
  func.func @transform_3(%arg0: i32, %arg1: memref<2x3xi32, #tpu.memory_space<smem>>) -> (i32, i32, i32, i32) {
    %c0_i32 = arith.constant 0 : i32
    %c0_i32_0 = arith.constant 0 : i32
    %c0_i32_1 = arith.constant 0 : i32
    %c0_i32_2 = arith.constant 0 : i32
    return %arg0, %c0_i32, %c0_i32_0, %c0_i32_1 : i32, i32, i32, i32
  }
  func.func @transform_4(%arg0: i32, %arg1: memref<2x3xi32, #tpu.memory_space<smem>>) -> (i32, i32, i32) {
    %c0_i32 = arith.constant 0 : i32
    %c0_i32_0 = arith.constant 0 : i32
    %c0_i32_1 = arith.constant 0 : i32
    return %arg0, %c0_i32, %c0_i32_0 : i32, i32, i32
  }
}

</mosaic_0001>

<bundles_post_ra>
// kernel: eq.12
= control target key start
LH: loop header
LB: loop body
LE: loop exit
PB: predicated region body
PF: predicated region fallthrough
CT: control target
= control target key end

     0   :  { %2 = vsyncpa [#allocation1], 0  ;;  %s160_s6 = smov [#allocation0]   ;;  %s205_s0 = inlined_call_operand.hbm [shape: s32[2,1,16,16], index: 0, kind: input, shape index: {}]   ;;  %s206_s1 = inlined_call_operand.vmem [shape: s32[2,256], index: 1, kind: output, shape index: {}]  }
   0x1   :  { %s7_s7 = sshll.u32 %s160_s6, 4  ;;  %s136_s10 = scalar_lea.hbm %s205_s0, 512  ;;  %s8_s7 = int_to_ptr.vmem [resolvable:$true] %s7_s7 }
   0x2   :  { %p137_p0 = scmp.ne.s32.totalorder %s205_s0, %s136_s10  ;;  %p140_p1 = scmp.lt.u32.totalorder %s136_s10, %s205_s0 }
   0x4   :  { %p142_p2 = pnand %p140_p1, %p137_p0 }
   0x6   :  { %145 = shalt.err (!%p142_p2)
}
   0x7   :  { %s146_s15 = scalar_lea.vmem %s8_s7, 512  ;;  %p151_p4 = scmp.lt.s32.totalorder %s8_s7, %s8_s7 }
   0x8   :  { %p147_p3 = scmp.ne.s32.totalorder %s8_s7, %s146_s15  ;;  %p152_p5 = scmp.lt.s32.totalorder %s146_s15, %s146_s15 }
   0xa   :  { %p153_p6 = por %p152_p5, %p151_p4 }
   0xc   :  { %p154_p7 = pnand %p153_p6, %p147_p3 }
   0xe   :  { %157 = shalt.err (!%p154_p7)
}
   0xf   :  { %10 = dma.hbm_to_vmem [thread:$0]  %s205_s0, 512, %s8_s7, [#allocation1]  }
  0x10   :  { %158 = dma.done.wait [#allocation1], 512  }
  0x11   :  { %159 = vsyncadd [#allocation1], 4294966784  ;;  %s18_s0 = smov 3  ;;  %s21_s18 = smov 12  ;;  %vm23_vm0 = vcmask 1043458   ;;  %vm13_vm1 = vcmask 130048  }
  0x12   :  { %s46_s19 = smov 3  ;;  %s49_s20 = smov 12  ;;  %v19_v0 = vld [vmem:[#allocation0 + $0x7] ss:$16 sm:%s18_s0]   ;;  %v22_v1 = vld [vmem:[#allocation0 - $0x11] ss:$16 sm:%s21_s18]  }
  0x13   :  { %s32_s21 = smov 3  ;;  %s35_s22 = smov 12  ;;  %v47_v2 = vld [vmem:[#allocation0 + $0x5] ss:$16 sm:%s46_s19]   ;;  %v24_v3 = vsel %vm23_vm0, %v22_v1, %v19_v0  ;;  %v50_v4 = vld [vmem:[#allocation0 - $0x13] ss:$16 sm:%s49_s20]  }
  0x14   :  { %s60_s23 = smov 3  ;;  %s63_s24 = smov 12  ;;  %v33_v5 = vld [vmem:[#allocation0 + $0x6] ss:$16 sm:%s32_s21]   ;;  %v36_v6 = vld [vmem:[#allocation0 - $0x12] ss:$16 sm:%s35_s22]   ;;  %v52_v7 = vsel %vm23_vm0, %v50_v4, %v47_v2 }
  0x15   :  { %s74_s25 = smov 3  ;;  %s77_s26 = smov 12  ;;  %v61_v8 = vld [vmem:[#allocation0 + $0x4] ss:$16 sm:%s60_s23]   ;;  %v64_v9 = vld [vmem:[#allocation0 - $0x14] ss:$16 sm:%s63_s24]   ;;  %v38_v10 = vsel %vm23_vm0, %v36_v6, %v33_v5 }
  0x16   :  { %s161_s27 = smov 112   ;;  %s162_s28 = smov 80   ;;  %v66_v11 = vsel %vm23_vm0, %v64_v9, %v61_v8  ;;  %v75_v12 = vld [vmem:[#allocation0 + $0x3] ss:$16 sm:%s74_s25]   ;;  %v78_v13 = vld [vmem:[#allocation0 - $0x15] ss:$16 sm:%s77_s26]  }
  0x17   :  { %25 = vrot.lane.b32.xlu0 %v24_v3, %s161_s27  ;;  %53 = vrot.lane.b32.xlu1 %v52_v7, %s162_s28  ;;  %s88_s29 = smov 3  ;;  %s91_s30 = smov 12  ;;  %v80_v16 = vsel %vm23_vm0, %v78_v13, %v75_v12  ;;  %v12_v17 = vld [vmem:[#allocation0] ss:$8 sm:$0xf]   ;;  %vm27_vm2 = vcmask 1048448  }
  0x18   :  { %v89_v14 = vld [vmem:[#allocation0 + $0x2] ss:$16 sm:%s88_s29]   ;;  %v92_v15 = vld [vmem:[#allocation0 - $0x16] ss:$16 sm:%s91_s30]   ;;  %s102_s2 = smov 3  ;;  %s105_s3 = smov 12 }
  0x19   :  { %s163_s4 = smov 96   ;;  %s164_s5 = smov 64   ;;  %v94_v18 = vsel %vm23_vm0, %v92_v15, %v89_v14  ;;  %v103_v19 = vld [vmem:[#allocation0 + $0x1] ss:$16 sm:%s102_s2]   ;;  %v106_v20 = vld [vmem:[#allocation0 - $0x17] ss:$16 sm:%s105_s3]  }
  0x1a   :  { %14 = vst.msk [vmem:[#allocation2] ss:$8 sm:$0x3] %vm13_vm1, %v12_v17   ;;  %16 = vst.msk [vmem:[#allocation2 - $0xf] ss:$8 sm:$0xc] %vm13_vm1, %v12_v17   ;;  %v108_v21 = vsel %vm23_vm0, %v106_v20, %v103_v19 }
  0x1b   :  { %39 = vrot.lane.b32.xlu0 %v38_v10, %s163_s4  ;;  %67 = vrot.lane.b32.xlu1 %v66_v11, %s164_s5  ;;  %s165_s6 = smov 48   ;;  %s166_s7 = smov 32   ;;  %vm41_vm3 = vcmask 917248   ;;  %vm55_vm4 = vcmask 786048   ;;  %vm69_vm5 = vcmask 654848   ;;  %vm83_vm6 = vcmask 523648  }
  0x1c   :  { %s167_s8 = smov 16   ;;  %vm97_vm7 = vcmask 392448   ;;  %vm111_vm8 = vcmask 261248  }
  0x1f   :  { %81 = vrot.lane.b32.xlu0 %v80_v16, %s165_s6  ;;  %95 = vrot.lane.b32.xlu1 %v94_v18, %s166_s7 }
  0x23   :  { %109 = vrot.lane.b32.xlu0 %v108_v21, %s167_s8 }
  0x89   :  { %v26_v22 = vpop.permute.xlu0 %25   ;;  %v54_v23 = vpop.permute.xlu1 %53  }
  0x8a   :  { %28 = vst.msk [vmem:[#allocation2] sm:$0x3] %vm27_vm2, %v26_v22   ;;  %30 = vst.msk [vmem:[#allocation2 + $0x6] sm:$0xc] %vm27_vm2, %v26_v22  }
  0x8d   :  { %v40_v24 = vpop.permute.xlu0 %39   ;;  %v68_v25 = vpop.permute.xlu1 %67  }
  0x8e   :  { %42 = vst.msk [vmem:[#allocation2] sm:$0x3] %vm41_vm3, %v40_v24   ;;  %44 = vst.msk [vmem:[#allocation2 + $0x6] sm:$0xc] %vm41_vm3, %v40_v24  }
  0x8f   :  { %56 = vst.msk [vmem:[#allocation2] sm:$0x3] %vm55_vm4, %v54_v23   ;;  %58 = vst.msk [vmem:[#allocation2 + $0x6] sm:$0xc] %vm55_vm4, %v54_v23  }
  0x90   :  { %70 = vst.msk [vmem:[#allocation2] sm:$0x3] %vm69_vm5, %v68_v25   ;;  %72 = vst.msk [vmem:[#allocation2 + $0x6] sm:$0xc] %vm69_vm5, %v68_v25  }
  0x91   :  { %v82_v26 = vpop.permute.xlu0 %81   ;;  %v96_v27 = vpop.permute.xlu1 %95  }
  0x92   :  { %84 = vst.msk [vmem:[#allocation2] sm:$0x3] %vm83_vm6, %v82_v26   ;;  %86 = vst.msk [vmem:[#allocation2 + $0x6] sm:$0xc] %vm83_vm6, %v82_v26  }
  0x93   :  { %98 = vst.msk [vmem:[#allocation2] sm:$0x3] %vm97_vm7, %v96_v27   ;;  %100 = vst.msk [vmem:[#allocation2 + $0x6] sm:$0xc] %vm97_vm7, %v96_v27  }
  0x95   :  { %v110_v28 = vpop.permute.xlu0 %109  }
  0x96   :  { %112 = vst.msk [vmem:[#allocation2] sm:$0x3] %vm111_vm8, %v110_v28   ;;  %114 = vst.msk [vmem:[#allocation2 + $0x6] sm:$0xc] %vm111_vm8, %v110_v28  }
  0x9d   :  { %v118_v29 = vld [vmem:[#allocation2] sm:$0x3]  ;;  %v122_v30 = vld [vmem:[#allocation2 + $0x8] sm:$0x3] }
  0x9e   :  { %120 = vst [vmem:[%s206_s1] sm:$0x3] %v118_v29  ;;  %127 = vst [vmem:[%s206_s1 + $0x2] sm:$0x3] %v122_v30 }
  0x9f   :  { %126 = vsyncpa [#allocation1], 1 }

// kernel: multi_spatial_emb_loss.1
= control target key start
LH: loop header
LB: loop body
LE: loop exit
PB: predicated region body
PF: predicated region fallthrough
CT: control target
= control target key end

     0   :  { %s1892_s0 = inlined_call_operand.vmem [shape: s32[2,3], index: 0, kind: input, shape index: {}]   ;;  %s1893_s1 = inlined_call_operand.vmem [shape: bf16[2,6,16,128], index: 1, kind: input, shape index: {}]   ;;  %s1894_s2 = inlined_call_operand.vmem [shape: bf16[2,3,16,128], index: 2, kind: input, shape index: {}]   ;;  %s1895_s3 = inlined_call_operand.vmem [shape: bf16[2,16,128], index: 3, kind: input, shape index: {}]   ;;  %s1896_s4 = inlined_call_operand.vmem [shape: bf16[2,3,16,128], index: 4, kind: output, shape index: {0}]   ;;  %s1897_s5 = inlined_call_operand.vmem [shape: f32[2,8,128], index: 5, kind: output, shape index: {1}]  }
   0x1   :  { %s11_s20 = sshll.u32 %s1892_s0, 4  ;;  %s12_s20 = int_to_ptr.vmem [resolvable:$true] %s11_s20 }
   0x2   :  { %s1390_s21 = scalar_lea.vmem %s12_s20, 32  ;;  %p1395_p1 = scmp.lt.s32.totalorder %s12_s20, %s12_s20 }
   0x3   :  { %p1391_p0 = scmp.ne.s32.totalorder %s12_s20, %s1390_s21  ;;  %p1396_p2 = scmp.lt.s32.totalorder %s1390_s21, %s1390_s21 }
   0x5   :  { %p1397_p3 = por %p1396_p2, %p1395_p1 }
   0x7   :  { %p1398_p4 = pnand %p1397_p3, %p1391_p0 }
   0x9   :  { %1401 = shalt.err (!%p1398_p4)  }
   0xa   :  { %s1412_s22 = smov [#allocation5]  }
   0xb   :  { %14 = dma.vmem_to_smem %s12_s20, 32, %s1412_s22, [#allocation4] }
   0xc   :  { %1406 = dma.done.wait [#allocation4], 32 }
   0xd   :  { %1407 = vsyncadd [#allocation4], 4294967264 }
   0xe   :  { %16 = sfence }
   0xf   :  { %s1451_s23 = smov 0  }
  0x10 LB: > { %s1457_s0 = sadd.s32 4294967295, %s1410_s23   ;;  %p1131_p5 = scmp.ge.s32.totalorder %s1410_s23, 1  ;;  %s1410_s23 = sphi %s1451_s23, %s22_s23  }
  0x11   : > { %p192_p6 = scmp.lt.s32.totalorder %s1410_s23, 3 }
  0x13   : > { %p193_p7 = pnand %p1131_p5, %p192_p6 }
  0x14   : > { %p232_p8 = scmp.lt.s32.totalorder (!%p193_p7), %s1457_s0, 1  ;;  %v1413_v0 = vmov (!%p193_p7), 0.0   ;;  %v268_v1 = vlaneseq (!%p193_p7)  ;;  %vm1414_vm9 = vmmov (!%p193_p7), 1   ;;  %s1138_s18 = sshll.u32 (!%p193_p7), %s1457_s0, 7 }
  0x15   : > { %196 = sbr.rel (%p193_p7) target bundleno = 656 (0x290), region = 32  ;;  %257 = vst [vmem:[#allocation2] sm:$0xff] (!%p193_p7), %v1413_v0  ;;  %258 = vst [vmem:[#allocation3] sm:$0xff] (!%p193_p7), %v1413_v0  ;;  %s1759_s19 = sld [smem:[#allocation5 + %s1138_s18]] (!%p193_p7) }
  0x16   : > { %v1486_v8 = vshrl.u32 (!%p193_p7), %v268_v1, 7  ;;  %v275_v51 = vand.u32 (!%p193_p7), 127, %v268_v1  ;;  %s262_s20 = sadd.s32 (!%p193_p7), 1, %s1138_s18  ;;  %s265_s22 = sadd.s32 (!%p193_p7), 2, %s1138_s18 }
  0x17   : > { %s1765_s21 = sld [smem:[#allocation5 + %s262_s20]] (!%p193_p7) }
  0x18   : > { %v1513_v21 = vadd.s32 (!%p193_p7), 8, %v1486_v8  ;;  %v276_v54 = vmul.u32 (!%p193_p7), 128, %v1486_v8 }
  0x1a   : > { %v277_v61 = vmul.u32 (!%p193_p7), 128, %v1513_v21 }
  0x1b   : > { %p1175_p9 = scmp.le.s32.totalorder (!%p193_p7), %s1759_s19, 0 }
  0x1c   : > { %s233_s24 = scalar_select %p232_p8, %s1457_s0, 1 }
  0x1d   : > { %s1768_s0 = sld [smem:[#allocation5 + %s265_s22]] }
  0x1e   : > { %s1203_s25 = sshll.u32 %s233_s24, 3  ;;  %s1275_s26 = smul.u32 24, %s233_s24 }
  0x1f   : > { %s246_s29 = scalar_lea.vmem %s1895_s3, %s1203_s25  ;;  %s1471_s7 = scalar_lea.vmem %s1897_s5, %s1203_s25 }
  0x20   : > { %v1215_v2 = vld [vmem:[%s246_s29] sm:$0xff]   ;;  %s241_s10 = scalar_lea.vmem %s1894_s2, %s1275_s26  ;;  %s1479_s13 = scalar_lea.vmem %s1896_s4, %s1275_s26 }
  0x21   : > { %v1481_v3 = vunpack.c.l.bf16 %v1215_v2  ;;  %v1483_v4 = vunpack.c.h.bf16 %v1215_v2  ;;  %v1219_v5 = vld [vmem:[%s241_s10] sm:$0xff]   ;;  %v1266_v6 = vld [vmem:[%s241_s10 + $0x8] sm:$0xff]   ;;  %v1267_v7 = vld [vmem:[%s241_s10 + $0x10] sm:$0xff]   ;;  %s1274_s14 = smul.u32 48, %s233_s24 }
  0x22   : > { %v1220_v9 = vunpack.c.l.bf16 %v1219_v5  ;;  %v1221_v10 = vunpack.c.h.bf16 %v1219_v5  ;;  %v1224_v11 = vunpack.c.l.bf16 %v1266_v6  ;;  %v1225_v12 = vunpack.c.h.bf16 %v1266_v6 }
  0x23   : > { %vm313_vm0 = vcmp.eq.f32.partialorder %v1481_v3, 1.0  ;;  %vm314_vm1 = vcmp.eq.f32.partialorder %v1483_v4, 1.0  ;;  %v1490_v13 = vunpack.c.l.bf16 %v1267_v7  ;;  %v1492_v14 = vunpack.c.h.bf16 %v1267_v7  ;;  %s1497_s17 = scalar_lea.vmem %s1893_s1, %s1274_s14 }
  0x24   : > { %v1500_v15 = vsel %vm313_vm0, 1.0, %v1413_v0  ;;  %v1503_v16 = vsel %vm314_vm1, 1.0, %v1413_v0  ;;  %vm423_vm2 = vcmp.ge.f32.partialorder %v1220_v9, %v1224_v11  ;;  %vm424_vm3 = vcmp.ge.f32.partialorder %v1221_v10, %v1225_v12  ;;  %v1265_v17 = vld [vmem:[%s1497_s17 + $0x10] sm:$0xff]   ;;  %v1268_v18 = vld [vmem:[%s1497_s17 + $0x28] sm:$0xff]   ;;  %v1269_v19 = vld [vmem:[%s1497_s17 + $0x18] sm:$0xff]  }
  0x25   : > { %v319_v20 = vadd.f32 %v1503_v16, %v1500_v15  ;;  %vm425_vm4 = vcmp.ge.f32.partialorder %v1220_v9, %v1490_v13  ;;  %vm426_vm5 = vcmp.ge.f32.partialorder %v1221_v10, %v1492_v14  ;;  %vm1520_vm7 = vcmp.ge.f32.partialorder %v1224_v11, %v1490_v13  ;;  %v1270_v41 = vld [vmem:[%s1497_s17 + $0x20] sm:$0xff]   ;;  %v1271_v2 = vld [vmem:[%s1497_s17 + $0x8] sm:$0xff]  }
  0x26   : > { %vm1515_vm6 = vmand %vm423_vm2, %vm425_vm4  ;;  %v1524_v24 = vunpack.c.l.bf16 %v1265_v17  ;;  %v1526_v25 = vunpack.c.h.bf16 %v1265_v17  ;;  %v1528_v26 = vunpack.c.l.bf16 %v1268_v18  ;;  %v1539_v29 = vunpack.c.h.bf16 %v1268_v18  ;;  %v1620_v17 = vld [vmem:[%s1497_s17] sm:$0xff]  }
  0x27   : > { %589 = vadd.xlane.f32.xlu0 %v319_v20  ;;  %vm1530_vm8 = vmand %vm424_vm3, %vm426_vm5  ;;  %v1537_v28 = vsel %vm1515_vm6, 1.0, %v1413_v0  ;;  %v1236_v30 = vunpack.c.l.bf16 %v1269_v19  ;;  %v1237_v31 = vunpack.c.h.bf16 %v1269_v19  ;;  %vm1549_vm11 = vcmp.ge.f32.partialorder %v1225_v12, %v1492_v14 }
  0x28   : > { %vm1544_vm10 = vmxor %vm1515_vm6, %vm1414_vm9  ;;  %v1556_v34 = vsel %vm1530_vm8, 1.0, %v1413_v0  ;;  %v329_v35 = vmul.f32 %v1524_v24, %v1500_v15  ;;  %v330_v36 = vmul.f32 %v1526_v25, %v1503_v16  ;;  %v1155_v38 = vmul.f32 -1.442695, %v1528_v26 }
  0x29   : > { %vm1565_vm12 = vmxor %vm1530_vm8, %vm1414_vm9  ;;  %v1156_v39 = vmul.f32 -1.442695, %v1539_v29  ;;  %v470_v40 = vmax.f32 %v1236_v30, 0.0  ;;  %v1167_v43 = vmul.f32 -1.442695, %v1236_v30  ;;  %v471_v45 = vmax.f32 %v1237_v31, 0.0 }
  0x2a   : > { %vm433_vm13 = vmand %vm1544_vm10, %vm1520_vm7  ;;  %v331_v42 = vadd.f32 %v330_v36, %v329_v35  ;;  %v1168_v44 = vmul.f32 -1.442695, %v1237_v31  ;;  %1322 = vpow2.f32 %v1155_v38  ;;  %v472_v47 = vmul.f32 %v1236_v30, %v1537_v28 }
  0x2b   : > { %vm434_vm14 = vmand %vm1565_vm12, %vm1549_vm11  ;;  %v1581_v46 = vsel %vm433_vm13, 1.0, %v1413_v0  ;;  %v473_v48 = vmul.f32 %v1237_v31, %v1556_v34  ;;  %1324 = vpow2.f32 %v1156_v39  ;;  %v1240_v50 = vunpack.c.l.bf16 %v1270_v41 }
  0x2c   : > { %vm435_vm15 = vmor %vm1515_vm6, %vm433_vm13  ;;  %v1588_v49 = vsel %vm434_vm14, 1.0, %v1413_v0  ;;  %624 = vadd.xlane.f32.xlu1 %v331_v42  ;;  %1326 = vpow2.f32 %v1167_v43  ;;  %v1593_v52 = vsub.f32 %v470_v40, %v472_v47  ;;  %v1241_v55 = vunpack.c.h.bf16 %v1270_v41 }
  0x2d   : > { %vm436_vm0 = vmor %vm1530_vm8, %vm434_vm14  ;;  %v1595_v53 = vsub.f32 %v471_v45, %v473_v48  ;;  %1328 = vpow2.f32 %v1168_v44  ;;  %v1171_v56 = vmul.f32 -1.442695, %v1240_v50  ;;  %v521_v57 = vmax.f32 %v1240_v50, 0.0 }
  0x2e   : > { %vm437_vm1 = vmxor %vm435_vm15, %vm1414_vm9  ;;  %v523_v59 = vmul.f32 %v1240_v50, %v1581_v46  ;;  %v553_v60 = vmax.f32 %v1528_v26, 0.0  ;;  %v1172_v63 = vmul.f32 -1.442695, %v1241_v55  ;;  %v554_v1 = vmax.f32 %v1539_v29, 0.0 }
  0x2f   : > { %vm438_vm2 = vmxor %vm436_vm0, %vm1414_vm9  ;;  %v1601_v58 = vsel %vm437_vm1, 1.0, %v1413_v0  ;;  %1330 = vpow2.f32 %v1171_v56  ;;  %v522_v5 = vmax.f32 %v1241_v55, 0.0  ;;  %v524_v6 = vmul.f32 %v1241_v55, %v1588_v49 }
  0x30   : > { %v1607_v62 = vsel %vm438_vm2, 1.0, %v1413_v0  ;;  %v1612_v7 = vsub.f32 %v521_v57, %v523_v59  ;;  %v278_v9 = vadd.s32 %v276_v54, %v275_v51  ;;  %v488_v10 = vsub.f32 1.0, %v1537_v28 }
  0x31   : > { %1332 = vpow2.f32 %v1172_v63  ;;  %v555_v11 = vmul.f32 %v1528_v26, %v1601_v58  ;;  %v556_v12 = vmul.f32 %v1539_v29, %v1607_v62  ;;  %v489_v18 = vsub.f32 1.0, %v1556_v34 }
  0x32   : > { %v1623_v19 = vsub.f32 %v522_v5, %v524_v6  ;;  %v1248_v20 = vunpack.c.l.bf16 %v1271_v2  ;;  %v1249_v21 = vunpack.c.h.bf16 %v1271_v2  ;;  %v539_v22 = vsub.f32 1.0, %v1581_v46 }
  0x33   : > { %v1626_v23 = vsub.f32 %v553_v60, %v555_v11  ;;  %v1628_v27 = vsub.f32 %v554_v1, %v556_v12  ;;  %vm333_vm3 = vcmp.eq.f32.partialorder %v1481_v3, 2.0  ;;  %v1244_v30 = vunpack.c.l.bf16 %v1620_v17 }
  0x34   : > { %v1323_v26 = vpop.eup %1322  ;;  %vm334_vm4 = vcmp.eq.f32.partialorder %v1483_v4, 2.0  ;;  %v1634_v29 = vsel %vm333_vm3, 1.0, %v1413_v0  ;;  %v279_v31 = vadd.s32 %v277_v61, %v275_v51  ;;  %1334 = vtanh.f32 %v1248_v20 }
  0x35   : > { %v1325_v32 = vpop.eup %1324  ;;  %v403_v33 = vadd.f32 1.0, %v1323_v26  ;;  %v1637_v35 = vsel %vm334_vm4, 1.0, %v1413_v0  ;;  %v1639_v36 = vcvt.s32.f32 %v278_v9  ;;  %1336 = vtanh.f32 %v1249_v21 }
  0x36   : > { %v1327_v37 = vpop.eup %1326  ;;  %v404_v38 = vadd.f32 1.0, %v1325_v32  ;;  %v339_v39 = vadd.f32 %v1637_v35, %v1634_v29  ;;  %v1643_v40 = vcvt.s32.f32 %v279_v31  ;;  %vm409_vm7 = vcmp.eq.f32.partialorder %v1490_v13, 0.0 }
  0x37   : > { %v1329_v41 = vpop.eup %1328  ;;  %1338 = vrcp.f32 %v403_v33  ;;  %v464_v42 = vadd.f32 1.0, %v1327_v37  ;;  %v282_v43 = vadd.f32 0.5, %v1639_v36  ;;  %vm292_vm5 = vcmp.lt.f32.partialorder %v1639_v36, 256.0 }
  0x38   : > { %1340 = vrcp.f32 %v404_v38  ;;  %v465_v44 = vadd.f32 1.0, %v1329_v41  ;;  %638 = vadd.xlane.f32.xlu0 %v339_v39  ;;  %v283_v45 = vadd.f32 0.5, %v1643_v40  ;;  %vm293_vm6 = vcmp.lt.f32.partialorder %v1643_v40, 256.0 }
  0x39   : > { %v1331_v47 = vpop.eup %1330  ;;  %1342 = vrcp.f32 %v464_v42  ;;  %v284_v48 = vmul.f32 0.0625, %v282_v43  ;;  %v1650_v50 = vsel %vm292_vm5, 1.0, %v1413_v0  ;;  %v1653_v51 = vsel %vm293_vm6, 1.0, %v1413_v0 }
  0x3a   : > { %1344 = vrcp.f32 %v465_v44  ;;  %v515_v54 = vadd.f32 1.0, %v1331_v47  ;;  %v285_v55 = vmul.f32 0.0625, %v283_v45  ;;  %v1245_v57 = vunpack.c.h.bf16 %v1620_v17 }
  0x3b   : > { %v1333_v56 = vpop.eup %1332  ;;  %v286_v59 = vfloor.f32 %v284_v48  ;;  %vm410_vm8 = vcmp.eq.f32.partialorder %v1492_v14, 0.0  ;;  %v1157_v60 = vsel %vm409_vm7, 1.0, %v1413_v0  ;;  %v540_v9 = vsub.f32 1.0, %v1588_v49 }
  0x3c   : > { %v516_v61 = vadd.f32 1.0, %v1333_v56  ;;  %1346 = vrcp.f32 %v515_v54  ;;  %v287_v63 = vfloor.f32 %v285_v55  ;;  %v1158_v1 = vsel %vm410_vm8, 1.0, %v1413_v0 }
  0x3d   : > { %v1660_v2 = vmul.f32 0.06666667, %v286_v59  ;;  %v415_v5 = vmul.f32 %v1157_v60, %v1650_v50  ;;  %v416_v6 = vmul.f32 %v1158_v1, %v1653_v51  ;;  %v1664_v13 = vmul.f32 16.0, %v286_v59 }
  0x3e   : > { %1348 = vrcp.f32 %v516_v61  ;;  %v1667_v11 = vmul.f32 0.06666667, %v287_v63  ;;  %v1669_v14 = vmul.f32 16.0, %v287_v63  ;;  %v1335_v12 = vpop.eup %1334  ;;  %v571_v17 = vsub.f32 1.0, %v1601_v58 }
  0x3f   : > { %v572_v20 = vsub.f32 1.0, %v1607_v62  ;;  %v345_v21 = vmul.f32 %v1634_v29, %v1660_v2  ;;  %v325_v26 = vmul.f32 %v1500_v15, %v1660_v2  ;;  %v1337_v31 = vpop.eup %1336  ;;  %1350 = vtanh.f32 %v1244_v30 }
  0x40   : > { %v346_v32 = vmul.f32 %v1637_v35, %v1667_v11  ;;  %v1680_v33 = vadd.f32 %v1335_v12, %v1660_v2  ;;  %v326_v37 = vmul.f32 %v1503_v16, %v1667_v11  ;;  %1352 = vtanh.f32 %v1245_v57 }
  0x41   : > { %v1684_v38 = vpop.eup %1338  ;;  %v1687_v39 = vadd.f32 %v1337_v31, %v1667_v11  ;;  %v290_v41 = vsub.f32 %v1639_v36, %v1664_v13  ;;  %v291_v30 = vsub.f32 %v1643_v40, %v1669_v14  ;;  %vm353_vm9 = vcmp.eq.f32.partialorder %v1481_v3, 3.0 }
  0x42   : > { %v1693_v42 = vpop.eup %1340  ;;  %v347_v43 = vadd.f32 %v346_v32, %v345_v21  ;;  %v417_v44 = vmul.f32 %v1684_v38, %v415_v5  ;;  %v559_v45 = vsub.f32 1.0, %v1684_v38  ;;  %v569_v47 = vmul.f32 %v1684_v38, %v1601_v58 }
  0x43   : > { %v1343_v48 = vpop.eup %1342  ;;  %v418_v54 = vmul.f32 %v1693_v42, %v416_v6  ;;  %v560_v36 = vsub.f32 1.0, %v1693_v42  ;;  %v570_v40 = vmul.f32 %v1693_v42, %v1607_v62  ;;  %v327_v55 = vadd.f32 %v326_v37, %v325_v26 }
  0x44   : > { %vm354_vm10 = vcmp.eq.f32.partialorder %v1483_v4, 3.0  ;;  %v1345_v56 = vpop.eup %1344  ;;  %662 = vadd.xlane.f32.xlu0 %v347_v43  ;;  %v419_v57 = vmul.f32 %v1684_v38, %v417_v44  ;;  %v476_v59 = vsub.f32 1.0, %v1343_v48  ;;  %v486_v58 = vmul.f32 %v1343_v48, %v1537_v28 }
  0x45   : > { %v561_v60 = vmax.f32 %v1684_v38, %v559_v45  ;;  %v420_v61 = vmul.f32 %v1693_v42, %v418_v54  ;;  %v477_v63 = vsub.f32 1.0, %v1345_v56  ;;  %v487_v1 = vmul.f32 %v1345_v56, %v1556_v34  ;;  %613 = vadd.xlane.f32.xlu1 %v327_v55 }
  0x46   : > { %v562_v5 = vmax.f32 %v1693_v42, %v560_v36  ;;  %v1347_v62 = vpop.eup %1346  ;;  %v478_v6 = vmax.f32 %v1343_v48, %v476_v59  ;;  %v490_v13 = vmul.f32 %v488_v10, %v476_v59  ;;  %v573_v14 = vmul.f32 %v571_v17, %v559_v45 }
  0x47   : > { %1354 = vlog2.f32 %v561_v60  ;;  %v1713_v12 = vadd.f32 %v420_v61, %v419_v57  ;;  %v479_v21 = vmax.f32 %v1345_v56, %v477_v63  ;;  %v491_v26 = vmul.f32 %v489_v18, %v477_v63 }
  0x48   : > { %v527_v31 = vsub.f32 1.0, %v1347_v62  ;;  %v1349_v32 = vpop.eup %1348  ;;  %1356 = vlog2.f32 %v478_v6  ;;  %v492_v37 = vadd.f32 %v490_v13, %v486_v58  ;;  %v537_v43 = vmul.f32 %v1347_v62, %v1581_v46 }
  0x49   : > { %v574_v44 = vmul.f32 %v572_v20, %v560_v36  ;;  %1358 = vlog2.f32 %v479_v21  ;;  %v493_v48 = vadd.f32 %v491_v26, %v487_v1  ;;  %v528_v54 = vsub.f32 1.0, %v1349_v32  ;;  %v1351_v10 = vpop.eup %1350 }
  0x4a   : > { %v529_v28 = vmax.f32 %v1347_v62, %v527_v31  ;;  %v538_v17 = vmul.f32 %v1349_v32, %v1588_v49  ;;  %v541_v45 = vmul.f32 %v539_v22, %v527_v31  ;;  %1360 = vlog2.f32 %v562_v5  ;;  %v1353_v18 = vpop.eup %1352 }
  0x4b   : > { %v298_v34 = vmul.f32 0.06666667, %v290_v41  ;;  %v494_v55 = vsub.f32 1.0, %v492_v37  ;;  %v530_v56 = vmax.f32 %v1349_v32, %v528_v54  ;;  %v542_v57 = vmul.f32 %v540_v9, %v528_v54 }
  0x4c   : > { %1362 = vlog2.f32 %v529_v28  ;;  %v495_v20 = vsub.f32 1.0, %v493_v48  ;;  %v543_v36 = vadd.f32 %v541_v45, %v537_v43  ;;  %v575_v59 = vadd.f32 %v573_v14, %v569_v47 }
  0x4d   : > { %v576_v58 = vadd.f32 %v574_v44, %v570_v40  ;;  %1364 = vlog2.f32 %v530_v56  ;;  %v544_v60 = vadd.f32 %v542_v57, %v538_v17  ;;  %v299_v61 = vmul.f32 0.06666667, %v291_v30 }
  0x4e   : > { %v1726_v46 = vsel %vm353_vm9, 1.0, %v1413_v0  ;;  %v577_v22 = vsub.f32 1.0, %v575_v59  ;;  %v321_v63 = vmul.f32 %v1500_v15, %v298_v34  ;;  %v1732_v49 = vsel %vm354_vm10, 1.0, %v1413_v0 }
  0x4f   : > { %v578_v41 = vsub.f32 1.0, %v576_v58  ;;  %v322_v9 = vmul.f32 %v1503_v16, %v299_v61  ;;  %v1735_v47 = vadd.f32 %v1351_v10, %v298_v34  ;;  %v1737_v40 = vadd.f32 %v1353_v18, %v299_v61 }
  0x50   : > { %v349_v3 = vmul.f32 %v1524_v24, %v1634_v29  ;;  %v496_v1 = vmul.f32 %v494_v55, %v494_v55  ;;  %v497_v5 = vmul.f32 %v495_v20, %v495_v20  ;;  %v545_v62 = vsub.f32 1.0, %v543_v36 }
  0x51   : > { %v1355_v30 = vpop.eup %1354  ;;  %v341_v6 = vmul.f32 %v1634_v29, %v298_v34  ;;  %v579_v14 = vmul.f32 %v577_v22, %v577_v22  ;;  %v323_v4 = vadd.f32 %v322_v9, %v321_v63  ;;  %v342_v0 = vmul.f32 %v1637_v35, %v299_v61 }
  0x52   : > { %v564_v13 = vmul.f32 0.6931472, %v1355_v30  ;;  %v1357_v21 = vpop.eup %1356  ;;  %v546_v26 = vsub.f32 1.0, %v544_v60  ;;  %v580_v31 = vmul.f32 %v578_v41, %v578_v41  ;;  %v359_v32 = vadd.f32 %v1732_v49, %v1726_v46 }
  0x53   : > { %v350_v37 = vmul.f32 %v1526_v25, %v1637_v35  ;;  %v1359_v43 = vpop.eup %1358  ;;  %v481_v44 = vmul.f32 0.6931472, %v1357_v21  ;;  %602 = vadd.xlane.f32.xlu0 %v323_v4  ;;  %v343_v54 = vadd.f32 %v342_v0, %v341_v6  ;;  %v365_v28 = vmul.f32 %v1726_v46, %v1660_v2 }
  0x54   : > { %v567_v48 = vsub.f32 %v1626_v23, %v564_v13  ;;  %v1361_v10 = vpop.eup %1360  ;;  %v483_v17 = vmul.f32 0.6931472, %v1359_v43  ;;  %v361_v45 = vmul.f32 %v1726_v46, %v298_v34  ;;  %v362_v18 = vmul.f32 %v1732_v49, %v299_v61 }
  0x55   : > { %v366_v55 = vmul.f32 %v1732_v49, %v1667_v11  ;;  %v484_v57 = vsub.f32 %v1593_v52, %v481_v44  ;;  %v566_v20 = vmul.f32 0.6931472, %v1361_v10  ;;  %651 = vadd.xlane.f32.xlu1 %v343_v54  ;;  %v351_v36 = vadd.f32 %v350_v37, %v349_v3 }
  0x56   : > { %v1363_v56 = vpop.eup %1362  ;;  %v581_v23 = vmul.f32 %v579_v14, %v567_v48  ;;  %v485_v59 = vsub.f32 %v1595_v53, %v483_v17  ;;  %v547_v58 = vmul.f32 %v545_v62, %v545_v62  ;;  %v548_v52 = vmul.f32 %v546_v26, %v546_v26 }
  0x57   : > { %v532_v2 = vmul.f32 0.6931472, %v1363_v56  ;;  %v1365_v60 = vpop.eup %1364  ;;  %v498_v22 = vmul.f32 %v496_v1, %v484_v57  ;;  %v568_v34 = vsub.f32 %v1628_v27, %v566_v20  ;;  %687 = vadd.xlane.f32.xlu0 %v359_v32  ;;  %v367_v61 = vadd.f32 %v366_v55, %v365_v28 }
  0x58   : > { %v499_v41 = vmul.f32 %v497_v5, %v485_v59  ;;  %v534_v11 = vmul.f32 0.6931472, %v1365_v60  ;;  %v363_v53 = vadd.f32 %v362_v18, %v361_v45  ;;  %v369_v3 = vmul.f32 %v1524_v24, %v1726_v46 }
  0x59   : > { %v535_v63 = vsub.f32 %v1612_v7, %v532_v2  ;;  %v582_v9 = vmul.f32 %v580_v31, %v568_v34  ;;  %673 = vadd.xlane.f32.xlu1 %v351_v36  ;;  %v370_v27 = vmul.f32 %v1526_v25, %v1732_v49 }
  0x5a   : > { %v536_v30 = vsub.f32 %v1623_v19, %v534_v11 }
  0x5b   : > { %v549_v1 = vmul.f32 %v547_v58, %v535_v63  ;;  %711 = vadd.xlane.f32.xlu0 %v367_v61  ;;  %v371_v62 = vadd.f32 %v370_v27, %v369_v3 }
  0x5c   : > { %v550_v7 = vmul.f32 %v548_v52, %v536_v30 }
  0x5d   : > { %v551_v5 = vadd.f32 %v549_v1, %v498_v22  ;;  %700 = vadd.xlane.f32.xlu1 %v363_v53 }
  0x5e   : > { %v552_v6 = vadd.f32 %v550_v7, %v499_v41 }
  0x5f   : > { %v583_v13 = vadd.f32 %v581_v23, %v551_v5 }
  0x60   : > { %v584_v14 = vadd.f32 %v582_v9, %v552_v6 }
  0x61   : > { %v585_v4 = vmul.f32 %v1650_v50, %v583_v13  ;;  %722 = vadd.xlane.f32.xlu1 %v371_v62 }
  0x62   : > { %v586_v0 = vmul.f32 %v1653_v51, %v584_v14 }
  0x64   : > { %v1772_v21 = vadd.f32 %v586_v0, %v585_v4 }
  0xb4   : > { %v590_v26 = vpop.xlane.xlu0 %589 }
  0xb5   : > { %v591_v19 = vrot.slane %v590_v26, 4 }
  0xb7   : > { %v592_v31 = vadd.f32 %v591_v19, %v590_v26 }
  0xb9   : > { %v593_v32 = vrot.slane %v592_v31, 2  ;;  %v625_v48 = vpop.xlane.xlu1 %624 }
  0xba   : > { %v626_v10 = vrot.slane %v625_v48, 4 }
  0xbb   : > { %v594_v37 = vadd.f32 %v593_v32, %v592_v31 }
  0xbc   : > { %v627_v55 = vadd.f32 %v626_v10, %v625_v48 }
  0xbd   : > { %v595_v43 = vrot.slane %v594_v37, 1 }
  0xbe   : > { %v628_v23 = vrot.slane %v627_v55, 2 }
  0xbf   : > { %v596_v44 = vadd.f32 %v595_v43, %v594_v37 }
  0xc0   : > { %v629_v52 = vadd.f32 %v628_v23, %v627_v55 }
  0xc1   : > { %1276 = vpush %v596_v44 }
  0xc2   : > { %v630_v14 = vrot.slane %v629_v52, 1 }
  0xc5   : > { %v639_v54 = vpop.xlane.xlu0 %638 }
  0xc6   : > { %v640_v18 = vrot.slane %v639_v54, 4 }
  0xc8   : > { %v641_v20 = vadd.f32 %v640_v18, %v639_v54 }
  0xca   : > { %v642_v60 = vrot.slane %v641_v20, 2 }
  0xcc   : > { %v643_v30 = vadd.f32 %v642_v60, %v641_v20 }
  0xce   : > { %v644_v37 = vrot.slane %v643_v30, 1 }
  0xd1   : > { %v663_v45 = vpop.xlane.xlu0 %662 }
  0xd2   : > { %v614_v28 = vpop.xlane.xlu1 %613  ;;  %v664_v56 = vrot.slane %v663_v45, 4 }
  0xd3   : > { %v615_v17 = vrot.slane %v614_v28, 4 }
  0xd4   : > { %v665_v36 = vadd.f32 %v664_v56, %v663_v45 }
  0xd5   : > { %v616_v57 = vadd.f32 %v615_v17, %v614_v28 }
  0xd6   : > { %v666_v41 = vrot.slane %v665_v36, 2 }
  0xd7   : > { %v617_v59 = vrot.slane %v616_v57, 2 }
  0xd8   : > { %v667_v4 = vadd.f32 %v666_v41, %v665_v36  ;;  %v645_v36 = vadd.f32 %v644_v37, %v643_v30 }
  0xd9   : > { %v618_v63 = vadd.f32 %v617_v59, %v616_v57  ;;  %v631_v57 = vadd.f32 %v630_v14, %v629_v52 }
  0xda   : > { %v668_v45 = vrot.slane %v667_v4, 1 }
  0xdb   : > { %v619_v13 = vrot.slane %v618_v63, 1 }
  0xdd   : > { %v620_v10 = vadd.f32 %v619_v13, %v618_v63 }
  0xe0   : > { %v603_v2 = vpop.xlane.xlu0 %602 }
  0xe1   : > { %v604_v58 = vrot.slane %v603_v2, 4 }
  0xe2   : > { %v652_v22 = vpop.xlane.xlu1 %651 }
  0xe3   : > { %v605_v34 = vadd.f32 %v604_v58, %v603_v2  ;;  %v653_v61 = vrot.slane %v652_v22, 4 }
  0xe4   : > { %v688_v11 = vpop.xlane.xlu0 %687 }
  0xe5   : > { %v606_v9 = vrot.slane %v605_v34, 2  ;;  %v654_v53 = vadd.f32 %v653_v61, %v652_v22  ;;  %v689_v3 = vrot.slane %v688_v11, 4  ;;  %v669_v61 = vadd.f32 %v668_v45, %v667_v4 }
  0xe6   : > { %v674_v27 = vpop.xlane.xlu1 %673 }
  0xe7   : > { %v655_v1 = vrot.slane %v654_v53, 2  ;;  %v690_v7 = vadd.f32 %v689_v3, %v688_v11  ;;  %v675_v5 = vrot.slane %v674_v27, 4  ;;  %v607_v62 = vadd.f32 %v606_v9, %v605_v34 }
  0xe8   : > { %v712_v6 = vpop.xlane.xlu0 %711 }
  0xe9   : > { %v691_v0 = vrot.slane %v690_v7, 2  ;;  %v676_v26 = vadd.f32 %v675_v5, %v674_v27  ;;  %v713_v19 = vrot.slane %v712_v6, 4  ;;  %v608_v31 = vrot.slane %v607_v62, 1 }
  0xea   : > { %v701_v32 = vpop.xlane.xlu1 %700  ;;  %v656_v43 = vadd.f32 %v655_v1, %v654_v53 }
  0xeb   : > { %v677_v44 = vrot.slane %v676_v26, 2  ;;  %v702_v48 = vrot.slane %v701_v32, 4  ;;  %v714_v54 = vadd.f32 %v713_v19, %v712_v6  ;;  %v609_v28 = vadd.f32 %v608_v31, %v607_v62 }
  0xec   : > { %v657_v17 = vrot.slane %v656_v43, 1  ;;  %v692_v18 = vadd.f32 %v691_v0, %v690_v7 }
  0xed   : > { %v703_v55 = vadd.f32 %v702_v48, %v701_v32  ;;  %v715_v56 = vrot.slane %v714_v54, 2  ;;  %1278 = vpush %v609_v28  ;;  %v678_v20 = vadd.f32 %v677_v44, %v676_v26 }
  0xee   : > { %v723_v23 = vpop.xlane.xlu1 %722  ;;  %1280 = vpush %v620_v10  ;;  %v658_v59 = vadd.f32 %v657_v17, %v656_v43  ;;  %v693_v2 = vrot.slane %v692_v18, 1 }
  0xef   : > { %v704_v58 = vrot.slane %v703_v55, 2  ;;  %v716_v60 = vadd.f32 %v715_v56, %v714_v54  ;;  %v724_v22 = vrot.slane %v723_v23, 4  ;;  %1282 = vpush %v631_v57  ;;  %v679_v34 = vrot.slane %v678_v20, 1 }
  0xf0   : > { %1284 = vpush %v645_v36  ;;  %v694_v41 = vadd.f32 %v693_v2, %v692_v18 }
  0xf1   : > { %v725_v11 = vadd.f32 %v724_v22, %v723_v23  ;;  %1286 = vpush %v658_v59  ;;  %v680_v63 = vadd.f32 %v679_v34, %v678_v20  ;;  %v705_v9 = vadd.f32 %v704_v58, %v703_v55  ;;  %v717_v53 = vrot.slane %v716_v60, 1 }
  0xf2   : > { %1288 = vpush %v669_v61  ;;  %s1277_s24 = spop %1276 }
  0xf3   : > { %v726_v52 = vrot.slane %v725_v11, 2  ;;  %1290 = vpush %v680_v63  ;;  %v706_v3 = vrot.slane %v705_v9, 1  ;;  %v718_v27 = vadd.f32 %v717_v53, %v716_v60  ;;  %v598_v62 = vstv %s1277_s24 }
  0xf4   : > { %1292 = vpush %v694_v41  ;;  %v599_v6 = vmax.f32 %v598_v62, 1.0 }
  0xf5   : > { %v727_v30 = vadd.f32 %v726_v52, %v725_v11  ;;  %v707_v1 = vadd.f32 %v706_v3, %v705_v9 }
  0xf6   : > { %1366 = vrcp.f32 %v599_v6 }
  0xf7   : > { %1294 = vpush %v707_v1  ;;  %v728_v7 = vrot.slane %v727_v30, 1 }
  0xf8   : > { %1296 = vpush %v718_v27 }
  0xf9   : > { %v729_v5 = vadd.f32 %v728_v7, %v727_v30 }
  0xfb   : > { %1298 = vpush %v729_v5 }
 0x100   : > { %v1774_v13 = vpop.eup %1366 }
 0x11e   : > { %s1279_s25 = spop %1278 }
 0x11f   : > { %v611_v14 = vstv %s1279_s25  ;;  %s1281_s26 = spop %1280 }
 0x120   : > { %v612_v4 = vmul.f32 %v1774_v13, %v611_v14  ;;  %v622_v0 = vstv %s1281_s26  ;;  %s1283_s27 = spop %1282 }
 0x121   : > { %v623_v26 = vmul.f32 %v1774_v13, %v622_v0  ;;  %v633_v19 = vstv %s1283_s27  ;;  %s1285_s28 = spop %1284 }
 0x122   : > { %v634_v31 = vmul.f32 %v1774_v13, %v633_v19  ;;  %v647_v32 = vstv %s1285_s28  ;;  %s1287_s29 = spop %1286  ;;  %v757_v9 = vsub.f32 (!%p1175_p9), %v1735_v47, %v612_v4  ;;  %v758_v53 = vsub.f32 (!%p1175_p9), %v1737_v40, %v612_v4 }
 0x123   : > { %v648_v37 = vmax.f32 %v647_v32, 1.0  ;;  %s1289_s30 = spop %1288  ;;  %v660_v10 = vstv %s1287_s29  ;;  %v759_v52 = vsub.f32 (!%p1175_p9), %v1680_v33, %v623_v26  ;;  %v760_v3 = vsub.f32 (!%p1175_p9), %v1687_v39, %v623_v26 }
 0x124   : > { %v635_v43 = vmul.f32 10.0, %v634_v31  ;;  %s1291_s6 = spop %1290  ;;  %v671_v17 = vstv %s1289_s30  ;;  %v801_v27 = vsub.f32 (!%p1175_p9), %v1524_v24, %v634_v31  ;;  %v802_v30 = vsub.f32 (!%p1175_p9), %v1526_v25, %v634_v31 }
 0x125   : > { %1368 = vrcp.f32 %v648_v37  ;;  %s1293_s8 = spop %1292  ;;  %v682_v45 = vstv %s1291_s6  ;;  %v761_v1 = vmul.f32 (!%p1175_p9), %v757_v9, %v757_v9  ;;  %v762_v7 = vmul.f32 (!%p1175_p9), %v758_v53, %v758_v53 }
 0x126   : > { %v636_v44 = vmul.f32 1.442695, %v635_v43  ;;  %v696_v48 = vstv %s1293_s8  ;;  %v763_v5 = vmul.f32 (!%p1175_p9), %v759_v52, %v759_v52  ;;  %v764_v62 = vmul.f32 (!%p1175_p9), %v760_v3, %v760_v3 }
 0x127   : > { %v697_v54 = vmax.f32 %v696_v48, 1.0  ;;  %v804_v6 = vmul.f32 (!%p1175_p9), %v1500_v15, %v801_v27  ;;  %v805_v14 = vmul.f32 (!%p1175_p9), %v1503_v16, %v802_v30 }
 0x128   : > { %1370 = vpow2.f32 %v636_v44  ;;  %s1295_s9 = spop %1294  ;;  %v765_v0 = vadd.f32 (!%p1175_p9), %v763_v5, %v761_v1  ;;  %v766_v19 = vadd.f32 (!%p1175_p9), %v764_v62, %v762_v7 }
 0x129   : > { %1372 = vrcp.f32 %v697_v54  ;;  %s1297_s10 = spop %1296  ;;  %v709_v36 = vstv %s1295_s9  ;;  %v806_v32 = vmul.f32 (!%p1175_p9), %v804_v6, %v801_v27  ;;  %v807_v4 = vmul.f32 (!%p1175_p9), %v805_v14, %v802_v30  ;;  %v803_v54 = vld [vmem:[#allocation3] sm:$0xff] (!%p1175_p9)  ;;  %v793_v30 = vld [vmem:[#allocation2] sm:$0xff] (!%p1175_p9) }
 0x12a   : > { %v720_v59 = vstv %s1297_s10  ;;  %v767_v37 = vsub.f32 (!%p1175_p9), 0.0, %v765_v0  ;;  %v768_v43 = vsub.f32 (!%p1175_p9), 0.0, %v766_v19 }
 0x12b   : > { %v808_v44 = vadd.f32 (!%p1175_p9), %v807_v4, %v806_v32 }
 0x12c   : > { %s1299_s11 = spop %1298 }
 0x12d   : > { %v731_v2 = vstv %s1299_s11  ;;  %v809_v31 = vmul.f32 (!%p1175_p9), %v1774_v13, %v808_v44 }
 0x12f   : > { %v1779_v28 = vpop.eup %1368 }
 0x130   : > { %v1782_v18 = vmul.f32 %v1779_v28, %v660_v10  ;;  %v1785_v55 = vmul.f32 %v1779_v28, %v671_v17  ;;  %v1788_v56 = vmul.f32 %v1779_v28, %v682_v45  ;;  %v810_v45 = vadd.f32 (!%p1175_p9), %v809_v31, %v803_v54 }
 0x132   : > { %v1371_v57 = vpop.eup %1370  ;;  %v684_v20 = vmul.f32 10.0, %v1788_v56  ;;  %811 = vst [vmem:[#allocation3] sm:$0xff] (!%p1175_p9), %v810_v45 }
 0x133   : > { %v1791_v23 = vpop.eup %1372  ;;  %v769_v26 = vmul.f32 (!%p1175_p9), %v1371_v57, %v767_v37  ;;  %v770_v48 = vmul.f32 (!%p1175_p9), %v1371_v57, %v768_v43 }
 0x134   : > { %v685_v58 = vmul.f32 1.442695, %v684_v20  ;;  %v1794_v60 = vmul.f32 %v1791_v23, %v709_v36  ;;  %v1797_v22 = vmul.f32 %v1791_v23, %v720_v59  ;;  %v1800_v34 = vmul.f32 %v1791_v23, %v731_v2 }
 0x135   : > { %v771_v10 = vmul.f32 (!%p1175_p9), 1.442695, %v769_v26  ;;  %v773_v17 = vmul.f32 (!%p1175_p9), 1.442695, %v770_v48 }
 0x136   : > { %1374 = vpow2.f32 %v685_v58  ;;  %v733_v61 = vmul.f32 10.0, %v1800_v34 }
 0x138   : > { %v734_v41 = vmul.f32 1.442695, %v733_v61 }
 0x13a   : > { %1376 = vpow2.f32 %v734_v41 }
 0x13b   : > { %1378 = vpow2.f32 (!%p1175_p9), %v771_v10 }
 0x13c   : > { %1380 = vpow2.f32 (!%p1175_p9), %v773_v17 }
 0x13e   : > { %756 = sbr.rel (%p1175_p9) target bundleno = 338 (0x152), region = 36 }
 0x140   : > { %v1803_v11 = vpop.eup %1374 }
 0x144   : > { %v1805_v63 = vpop.eup %1376 }
 0x145   : > { %v1379_v20 = vpop.eup %1378 }
 0x146   : > { %v1381_v36 = vpop.eup %1380  ;;  %v775_v59 = vmul.f32 2.0, %v1379_v20  ;;  %v791_v2 = vsub.f32 %v1684_v38, %v1379_v20 }
 0x147   : > { %v776_v58 = vmul.f32 2.0, %v1381_v36  ;;  %v792_v61 = vsub.f32 %v1693_v42, %v1381_v36 }
 0x148   : > { %v777_v57 = vmul.f32 %v1650_v50, %v775_v59  ;;  %v794_v41 = vmul.f32 %v1500_v15, %v791_v2 }
 0x149   : > { %v778_v13 = vmul.f32 %v1653_v51, %v776_v58  ;;  %v795_v9 = vmul.f32 %v1503_v16, %v792_v61 }
 0x14a   : > { %v1176_v53 = vadd.f32 -1.0, %v777_v57  ;;  %v796_v52 = vmul.f32 %v794_v41, %v791_v2 }
 0x14b   : > { %v1177_v3 = vadd.f32 -1.0, %v778_v13  ;;  %v797_v27 = vmul.f32 %v795_v9, %v792_v61 }
 0x14d   : > { %v1253_v1 = vpack.c.bf16 %v1177_v3, %v1176_v53  ;;  %v798_v7 = vadd.f32 %v797_v27, %v796_v52 }
 0x14f   : > { %1254 = vst [vmem:[%s1479_s13] sm:$0xff] %v1253_v1   ;;  %v799_v5 = vadd.f32 %v798_v7, %v793_v30 }
 0x151   : > { %800 = vst [vmem:[#allocation2] sm:$0xff] %v799_v5 }
 0x152 PF: > { %p1180_p10 = scmp.gt.s32.totalorder %s1759_s19, 0 }
 0x153   : > { %v1415_v62 = vmov (!%p1180_p10), 3212885888  }
 0x154   : > { %815 = sbr.rel (%p1180_p10) target bundleno = 347 (0x15b), region = 40  ;;  %816 = vst [vmem:[%s1479_s13] sm:$0xf] (!%p1180_p10), %v1415_v62  ;;  %817 = vst [vmem:[%s1479_s13 + $0x4] sm:$0xf] (!%p1180_p10), %v1415_v62 }
 0x15b PF: > { %p1181_p11 = scmp.le.s32.totalorder %s1765_s21, 0 }
 0x15c   : > { %v821_v15 = vsub.f32 (!%p1181_p11), %v1735_v47, %v1782_v18  ;;  %v822_v16 = vsub.f32 (!%p1181_p11), %v1737_v40, %v1782_v18  ;;  %v823_v6 = vsub.f32 (!%p1181_p11), %v1680_v33, %v1785_v55  ;;  %v824_v14 = vsub.f32 (!%p1181_p11), %v1687_v39, %v1785_v55  ;;  %v859_v5 = vld [vmem:[#allocation2] sm:$0xff] (!%p1181_p11) }
 0x15d   : > { %820 = sbr.rel (%p1181_p11) target bundleno = 383 (0x17f), region = 44  ;;  %v867_v0 = vsub.f32 (!%p1181_p11), %v1524_v24, %v1788_v56  ;;  %v868_v19 = vsub.f32 (!%p1181_p11), %v1526_v25, %v1788_v56  ;;  %v869_v56 = vld [vmem:[#allocation3] sm:$0xff] (!%p1181_p11) }
 0x15e   : > { %v825_v32 = vmul.f32 (!%p1181_p11), %v821_v15, %v821_v15  ;;  %v826_v4 = vmul.f32 (!%p1181_p11), %v822_v16, %v822_v16  ;;  %v827_v37 = vmul.f32 (!%p1181_p11), %v823_v6, %v823_v6  ;;  %v828_v43 = vmul.f32 (!%p1181_p11), %v824_v14, %v824_v14 }
 0x15f   : > { %v870_v44 = vmul.f32 (!%p1181_p11), %v1634_v29, %v867_v0  ;;  %v871_v18 = vmul.f32 (!%p1181_p11), %v1637_v35, %v868_v19 }
 0x160   : > { %v829_v26 = vadd.f32 (!%p1181_p11), %v827_v37, %v825_v32  ;;  %v830_v48 = vadd.f32 (!%p1181_p11), %v828_v43, %v826_v4 }
 0x161   : > { %v872_v54 = vmul.f32 (!%p1181_p11), %v870_v44, %v867_v0  ;;  %v873_v31 = vmul.f32 (!%p1181_p11), %v871_v18, %v868_v19 }
 0x162   : > { %v831_v10 = vsub.f32 (!%p1181_p11), 0.0, %v829_v26  ;;  %v832_v55 = vsub.f32 (!%p1181_p11), 0.0, %v830_v48 }
 0x163   : > { %v874_v17 = vadd.f32 (!%p1181_p11), %v873_v31, %v872_v54 }
 0x164   : > { %v833_v45 = vmul.f32 %v1803_v11, %v831_v10  ;;  %v834_v20 = vmul.f32 %v1803_v11, %v832_v55 }
 0x165   : > { %v875_v36 = vmul.f32 %v1779_v28, %v874_v17 }
 0x166   : > { %v835_v59 = vmul.f32 1.442695, %v833_v45  ;;  %v837_v2 = vmul.f32 1.442695, %v834_v20 }
 0x167   : > { %v876_v58 = vadd.f32 %v875_v36, %v869_v56 }
 0x168   : > { %1382 = vpow2.f32 %v835_v59 }
 0x169   : > { %1384 = vpow2.f32 %v837_v2  ;;  %877 = vst [vmem:[#allocation3] sm:$0xff] %v876_v58 }
 0x172   : > { %v1383_v61 = vpop.eup %1382 }
 0x173   : > { %v1385_v57 = vpop.eup %1384  ;;  %v839_v41 = vmul.f32 2.0, %v1383_v61  ;;  %v857_v13 = vsub.f32 %v1684_v38, %v1383_v61 }
 0x174   : > { %v840_v9 = vmul.f32 2.0, %v1385_v57  ;;  %v858_v53 = vsub.f32 %v1693_v42, %v1385_v57 }
 0x175   : > { %v841_v11 = vmul.f32 %v1650_v50, %v839_v41  ;;  %v860_v52 = vmul.f32 %v1634_v29, %v857_v13 }
 0x176   : > { %v842_v28 = vmul.f32 %v1653_v51, %v840_v9  ;;  %v861_v3 = vmul.f32 %v1637_v35, %v858_v53 }
 0x177   : > { %v1182_v27 = vadd.f32 -1.0, %v841_v11  ;;  %v862_v30 = vmul.f32 %v860_v52, %v857_v13 }
 0x178   : > { %v1183_v1 = vadd.f32 -1.0, %v842_v28  ;;  %v863_v7 = vmul.f32 %v861_v3, %v858_v53 }
 0x17a   : > { %v1258_v62 = vpack.c.bf16 %v1183_v1, %v1182_v27  ;;  %v864_v15 = vadd.f32 %v863_v7, %v862_v30 }
 0x17c   : > { %1272 = vst [vmem:[%s1479_s13 + $0x8] sm:$0xff] %v1258_v62   ;;  %v865_v16 = vadd.f32 %v864_v15, %v859_v5 }
 0x17e   : > { %866 = vst [vmem:[#allocation2] sm:$0xff] %v865_v16 }
 0x17f PF: > { %p1188_p12 = scmp.gt.s32.totalorder %s1765_s21, 0 }
 0x180   : > { %v1416_v6 = vmov (!%p1188_p12), 3212885888  }
 0x181   : > { %881 = sbr.rel (%p1188_p12) target bundleno = 392 (0x188), region = 48  ;;  %1189 = vst [vmem:[%s1479_s13 + $0x8] sm:$0xf] (!%p1188_p12), %v1416_v6  ;;  %1190 = vst [vmem:[%s1479_s13 + $0xc] sm:$0xf] (!%p1188_p12), %v1416_v6 }
 0x188 PF: > { %p1191_p13 = scmp.le.s32.totalorder %s1768_s0, 0 }
 0x189   : > { %v889_v29 = vsub.f32 (!%p1191_p13), %v1735_v47, %v1794_v60  ;;  %v890_v35 = vsub.f32 (!%p1191_p13), %v1737_v40, %v1794_v60  ;;  %v891_v14 = vsub.f32 (!%p1191_p13), %v1680_v33, %v1797_v22  ;;  %v892_v0 = vsub.f32 (!%p1191_p13), %v1687_v39, %v1797_v22  ;;  %v927_v9 = vld [vmem:[#allocation2] sm:$0xff] (!%p1191_p13) }
 0x18a   : > { %888 = sbr.rel (%p1191_p13) target bundleno = 428 (0x1ac), region = 52  ;;  %v935_v19 = vsub.f32 (!%p1191_p13), %v1524_v24, %v1800_v34  ;;  %v936_v32 = vsub.f32 (!%p1191_p13), %v1526_v25, %v1800_v34  ;;  %v937_v25 = vld [vmem:[#allocation3] sm:$0xff] (!%p1191_p13) }
 0x18b   : > { %v893_v4 = vmul.f32 (!%p1191_p13), %v889_v29, %v889_v29  ;;  %v894_v37 = vmul.f32 (!%p1191_p13), %v890_v35, %v890_v35  ;;  %v895_v43 = vmul.f32 (!%p1191_p13), %v891_v14, %v891_v14  ;;  %v896_v44 = vmul.f32 (!%p1191_p13), %v892_v0, %v892_v0 }
 0x18c   : > { %v938_v47 = vmul.f32 (!%p1191_p13), %v1726_v46, %v935_v19  ;;  %v939_v40 = vmul.f32 (!%p1191_p13), %v1732_v49, %v936_v32 }
 0x18d   : > { %v897_v60 = vadd.f32 (!%p1191_p13), %v895_v43, %v893_v4  ;;  %v898_v18 = vadd.f32 (!%p1191_p13), %v896_v44, %v894_v37 }
 0x18e   : > { %v940_v33 = vmul.f32 (!%p1191_p13), %v938_v47, %v935_v19  ;;  %v941_v26 = vmul.f32 (!%p1191_p13), %v939_v40, %v936_v32 }
 0x18f   : > { %v899_v48 = vsub.f32 (!%p1191_p13), 0.0, %v897_v60  ;;  %v900_v39 = vsub.f32 (!%p1191_p13), 0.0, %v898_v18 }
 0x190   : > { %v942_v22 = vadd.f32 (!%p1191_p13), %v941_v26, %v940_v33 }
 0x191   : > { %v901_v24 = vmul.f32 %v1805_v63, %v899_v48  ;;  %v902_v54 = vmul.f32 %v1805_v63, %v900_v39 }
 0x192   : > { %v943_v34 = vmul.f32 %v1791_v23, %v942_v22 }
 0x193   : > { %v903_v31 = vmul.f32 1.442695, %v901_v24  ;;  %v905_v10 = vmul.f32 1.442695, %v902_v54 }
 0x194   : > { %v944_v55 = vadd.f32 %v943_v34, %v937_v25 }
 0x195   : > { %1386 = vpow2.f32 %v903_v31 }
 0x196   : > { %1388 = vpow2.f32 %v905_v10  ;;  %945 = vst [vmem:[#allocation3] sm:$0xff] %v944_v55 }
 0x19f   : > { %v1387_v17 = vpop.eup %1386 }
 0x1a0   : > { %v1389_v45 = vpop.eup %1388  ;;  %v907_v20 = vmul.f32 2.0, %v1387_v17  ;;  %v925_v56 = vsub.f32 %v1684_v38, %v1387_v17 }
 0x1a1   : > { %v908_v36 = vmul.f32 2.0, %v1389_v45  ;;  %v926_v59 = vsub.f32 %v1693_v42, %v1389_v45 }
 0x1a2   : > { %v909_v63 = vmul.f32 %v1650_v50, %v907_v20  ;;  %v928_v2 = vmul.f32 %v1726_v46, %v925_v56 }
 0x1a3   : > { %v910_v23 = vmul.f32 %v1653_v51, %v908_v36  ;;  %v929_v58 = vmul.f32 %v1732_v49, %v926_v59 }
 0x1a4   : > { %v1192_v61 = vadd.f32 -1.0, %v909_v63  ;;  %v930_v57 = vmul.f32 %v928_v2, %v925_v56 }
 0x1a5   : > { %v1193_v41 = vadd.f32 -1.0, %v910_v23  ;;  %v931_v13 = vmul.f32 %v929_v58, %v926_v59 }
 0x1a7   : > { %v1263_v53 = vpack.c.bf16 %v1193_v41, %v1192_v61  ;;  %v932_v11 = vadd.f32 %v931_v13, %v930_v57 }
 0x1a9   : > { %1273 = vst [vmem:[%s1479_s13 + $0x10] sm:$0xff] %v1263_v53   ;;  %v933_v38 = vadd.f32 %v932_v11, %v927_v9 }
 0x1ab   : > { %934 = vst [vmem:[#allocation2] sm:$0xff] %v933_v38 }
 0x1ac PF: > { %p1198_p0 = scmp.gt.s32.totalorder %s1768_s0, 0 }
 0x1ad   : > { %v1417_v50 = vmov (!%p1198_p0), 3212885888  }
 0x1ae   : > { %949 = sbr.rel (%p1198_p0) target bundleno = 437 (0x1b5), region = 56  ;;  %1199 = vst [vmem:[%s1479_s13 + $0x10] sm:$0xf] (!%p1198_p0), %v1417_v50  ;;  %1200 = vst [vmem:[%s1479_s13 + $0x14] sm:$0xf] (!%p1198_p0), %v1417_v50 }
 0x1b5 PF: > { %v974_v51 = vld [vmem:[#allocation2] sm:$0xff]  ;;  %v954_v42 = vld [vmem:[#allocation3] sm:$0xff]  ;;  %vm995_vm11 = vcmp.eq.s32.totalorder %v1486_v8, 0  ;;  %vm998_vm12 = vcmp.eq.s32.totalorder %v1486_v8, 1  ;;  %vm1001_vm13 = vcmp.eq.s32.totalorder %v1486_v8, 2 }
 0x1b6   : > { %975 = vadd.xlane.f32.xlu1 %v974_v51  ;;  %955 = vadd.xlane.f32.xlu0 %v954_v42 }
 0x1ba   : > { %986 = vadd.xlane.f32.xlu1 %v1772_v21  ;;  %964 = vadd.xlane.f32.xlu0 %v1713_v12 }
 0x243   : > { %v976_v46 = vpop.xlane.xlu1 %975  ;;  %v956_v49 = vpop.xlane.xlu0 %955 }
 0x244   : > { %v977_v52 = vrot.slane %v976_v46, 4  ;;  %v957_v28 = vrot.slane %v956_v49, 4 }
 0x246   : > { %v978_v3 = vadd.f32 %v977_v52, %v976_v46  ;;  %v958_v27 = vadd.f32 %v957_v28, %v956_v49 }
 0x247   : > { %v987_v30 = vpop.xlane.xlu1 %986  ;;  %v965_v1 = vpop.xlane.xlu0 %964 }
 0x248   : > { %v979_v7 = vrot.slane %v978_v3, 2  ;;  %v959_v5 = vrot.slane %v958_v27, 2  ;;  %v988_v62 = vrot.slane %v987_v30, 4  ;;  %v966_v15 = vrot.slane %v965_v1, 4 }
 0x24a   : > { %v989_v16 = vadd.f32 %v988_v62, %v987_v30  ;;  %v967_v6 = vadd.f32 %v966_v15, %v965_v1  ;;  %v960_v29 = vadd.f32 %v959_v5, %v958_v27  ;;  %v980_v35 = vadd.f32 %v979_v7, %v978_v3 }
 0x24c   : > { %v990_v14 = vrot.slane %v989_v16, 2  ;;  %v968_v21 = vrot.slane %v967_v6, 2  ;;  %v961_v0 = vrot.slane %v960_v29, 1  ;;  %v981_v4 = vrot.slane %v980_v35, 1 }
 0x24e   : > { %v991_v12 = vadd.f32 %v990_v14, %v989_v16  ;;  %v969_v19 = vadd.f32 %v968_v21, %v967_v6  ;;  %v962_v32 = vadd.f32 %v961_v0, %v960_v29  ;;  %v982_v40 = vadd.f32 %v981_v4, %v980_v35 }
 0x250   : > { %1300 = vpush %v962_v32  ;;  %v970_v37 = vrot.slane %v969_v19, 1  ;;  %v992_v43 = vrot.slane %v991_v12, 1 }
 0x252   : > { %v971_v44 = vadd.f32 %v970_v37, %v969_v19  ;;  %v993_v47 = vadd.f32 %v992_v43, %v991_v12 }
 0x254   : > { %1302 = vpush %v971_v44 }
 0x255   : > { %1304 = vpush %v982_v40 }
 0x256   : > { %1306 = vpush %v993_v47 }
 0x281   : > { %s1301_s12 = spop %1300 }
 0x282   : > { %v996_v18 = vstv %s1301_s12 }
 0x283   : > { %v997_v39 = vsel %vm995_vm11, %v996_v18, 0.0 }
 0x285   : > { %s1303_s13 = spop %1302 }
 0x286   : > { %v973_v60 = vstv %s1303_s13  ;;  %s1305_s14 = spop %1304 }
 0x287   : > { %v984_v33 = vstv %s1305_s14  ;;  %s1307_s15 = spop %1306 }
 0x288   : > { %v985_v26 = vadd.f32 %v984_v33, %v973_v60  ;;  %v1002_v48 = vstv %s1307_s15 }
 0x289   : > { %v1003_v54 = vsel %vm1001_vm13, %v1002_v48, 0.0 }
 0x28a   : > { %v999_v22 = vsel %vm998_vm12, %v985_v26, 0.0 }
 0x28b   : > { %v1000_v24 = vadd.f32 %v999_v22, %v997_v39 }
 0x28d   : > { %v1004_v25 = vadd.f32 %v1003_v54, %v1000_v24 }
 0x28f   : > { %1005 = vst [vmem:[%s1471_s7] sm:$0xff] %v1004_v25 }
 0x290 PF: > { %s22_s23 = sadd.s32 1, %s1410_s23  }
 0x291   : > { %p19_p1 = scmp.ge.s32.totalorder %s22_s23, 4  }
 0x293   :  { %21 = sbr.rel (!%p19_p1) target bundleno = 16 (0x10), region = 115 }

</bundles_post_ra>
